<compile_context>
chip_gen: v7x
topology: tpu7x:2x2x1
jax: 0.10.0
libtpu: 0.0.40
codegen_flags: <defaults>
</compile_context>

<pallas_src>
import math

import jax
import jax.numpy as jnp
from jax.experimental import pallas as pl
from jax.experimental.pallas import tpu as pltpu

# ---------------- config (small synthetic shapes) ----------------
D = 32            # hidden size (both towers)
NUM_HEADS = 4
HEAD_DIM = D // NUM_HEADS
MLP = 64
NUM_LAYERS = 2
PROJ_DIM = 16     # shared projection dim
VOCAB = 64
MAX_POS = 16
SEQ_T = 8         # text sequence length
IMG = 16          # image spatial size
CHAN = 3          # image channels
PATCH = 4
CPP = CHAN * PATCH * PATCH                  # 48
N_PATCH = (IMG // PATCH) * (IMG // PATCH)   # 16
SEQ_V = N_PATCH + 1                         # +CLS = 17
BATCH = 2

ATT_SCALE = 1.0 / math.sqrt(HEAD_DIM)
F32 = jnp.float32

# Per-layer packed vector slab (L, 8, 3D) row layout:
#   0: bqkv(3D)  1: bo(D)  2: ln1_g  3: ln1_b  4: b1(MLP)  5: b2(D)  6: ln2_g  7: ln2_b
# Text head slab (80, D) row layout:
#   0..7: pos+type  8: emb_ln_g  9: emb_ln_b  10: pooler_b  11..15: pad
#   16..47: pooler_w  48..79: text_projection (lane-padded to D)
# Vision head slab (104, D) row layout:
#   0..47: patch-embed weight  48..63: patch pos-emb  64: cls_emb+pos[0]
#   65: pre_ln_g  66: pre_ln_b  67: post_ln_g  68: post_ln_b  69..71: pad
#   72..103: visual_projection (lane-padded to D)


# ---------------- in-kernel helpers ----------------
def _ln(x, g, b, eps):
    mu = jnp.mean(x, axis=-1, keepdims=True)
    var = jnp.mean((x - mu) * (x - mu), axis=-1, keepdims=True)
    return (x - mu) * jax.lax.rsqrt(var + eps) * g + b


def _gelu(x):          # tanh-approx GELU (BERT MLP)
    return 0.5 * x * (1.0 + jnp.tanh(0.7978845608028654 * (x + 0.044715 * x * x * x)))


def _quick_gelu(x):    # CLIP ViT activation
    return x * jax.nn.sigmoid(1.702 * x)


def _softmax(s):
    s = s - jnp.max(s, axis=-1, keepdims=True)
    p = jnp.exp(s)
    # divide on the EUP slot instead of VALU divide sequences
    return p * pl.reciprocal(jnp.sum(p, axis=-1, keepdims=True), approx=True)


def _fused_mha(x, wqkv, wo, vec):
    """Multi-head attention for one sequence, fully inside the kernel.

    x: (S, D).  wqkv: (D, 3D) fused QKV weight.  wo: (D, D) output projection
    (rows grouped per head).  vec: (8, 3D) per-layer bias/LN slab (row 0 = bqkv,
    row 1 = bo).  Output projection is folded in per head; no head merge needed.
    """
    qkv = jnp.dot(x, wqkv, preferred_element_type=F32) + vec[0:1, :]     # (S, 3D)
    out = vec[1:2, 0:D]                                                  # bo (broadcast)
    for h in range(NUM_HEADS):                                           # unrolled, H=4
        lo = h * HEAD_DIM
        hi = lo + HEAD_DIM
        q = qkv[:, lo:hi]                                                # (S, Dh)
        k = qkv[:, D + lo:D + hi]
        v = qkv[:, 2 * D + lo:2 * D + hi]
        # q @ k^T without materializing a transpose (contract last dims).
        s = jax.lax.dot_general(q, k, (((1,), (1,)), ((), ())),
                                preferred_element_type=F32) * ATT_SCALE  # (S, S)
        p = _softmax(s)
        o_h = jnp.dot(p, v, preferred_element_type=F32)                  # (S, Dh)
        out = out + jnp.dot(o_h, wo[lo:hi, :], preferred_element_type=F32)
    return out


# ---------------- fused text tower kernel (post-LN BERT) ----------------
def _text_tower_kernel(ids_ref, tok_emb_ref, wqkv_ref, wo_ref, w1_ref, w2_ref,
                       vecs_ref, head_ref, out_ref):
    # In-kernel embedding gather as a one-hot matmul (VOCAB is tiny: 64 rows).
    iota = jax.lax.broadcasted_iota(jnp.int32, (SEQ_T, VOCAB), 1)
    onehot = (ids_ref[0] == iota).astype(F32)                            # (S, VOCAB)
    x = jnp.dot(onehot, tok_emb_ref[...], preferred_element_type=F32)    # (S, D)
    x = x + head_ref[0:SEQ_T, :]                                         # + pos + type0
    x = _ln(x, head_ref[8:9, :], head_ref[9:10, :], 1e-12)
    for l in range(NUM_LAYERS):                                          # unrolled
        vec = vecs_ref[l]                                                # (8, 3D)
        a = _fused_mha(x, wqkv_ref[l], wo_ref[l], vec)
        x = _ln(x + a, vec[2:3, 0:D], vec[3:4, 0:D], 1e-12)
        h = _gelu(jnp.dot(x, w1_ref[l], preferred_element_type=F32) + vec[4:5, 0:MLP])
        h = jnp.dot(h, w2_ref[l], preferred_element_type=F32) + vec[5:6, 0:D]
        x = _ln(x + h, vec[6:7, 0:D], vec[7:8, 0:D], 1e-12)
    cls = x[0:1, :]                                                      # [CLS] row
    pooled = jnp.tanh(jnp.dot(cls, head_ref[16:48, :], preferred_element_type=F32)
                      + head_ref[10:11, :])
    out_ref[0] = jnp.dot(pooled, head_ref[48:80, :],
                         preferred_element_type=F32)[:, 0:PROJ_DIM]


# ---------------- fused vision tower kernel (pre-LN CLIP ViT) ----------------
def _vision_tower_kernel(patch_ref, wqkv_ref, wo_ref, w1_ref, w2_ref,
                         vecs_ref, head_ref, out_ref):
    # Patch embedding (conv lowered to matmul) fused into the kernel.
    pe = jnp.dot(patch_ref[0], head_ref[0:CPP, :], preferred_element_type=F32)  # (N, D)
    # Token order: [patches..., CLS] so all sublane offsets are 8-aligned.
    # Attention is permutation-equivariant; each token keeps its own pos-emb,
    # and pooling reads the CLS row -> numerically equivalent to CLS-first.
    x = jnp.concatenate([pe + head_ref[CPP:CPP + N_PATCH, :],
                         head_ref[64:65, :]], axis=0)                    # (SEQ_V, D)
    x = _ln(x, head_ref[65:66, :], head_ref[66:67, :], 1e-5)             # pre-LN
    for l in range(NUM_LAYERS):                                          # unrolled
        vec = vecs_ref[l]
        h = _ln(x, vec[2:3, 0:D], vec[3:4, 0:D], 1e-5)
        x = x + _fused_mha(h, wqkv_ref[l], wo_ref[l], vec)
        h = _ln(x, vec[6:7, 0:D], vec[7:8, 0:D], 1e-5)
        h = _quick_gelu(jnp.dot(h, w1_ref[l], preferred_element_type=F32)
                        + vec[4:5, 0:MLP])
        h = jnp.dot(h, w2_ref[l], preferred_element_type=F32) + vec[5:6, 0:D]
        x = x + h
    cls = x[N_PATCH:N_PATCH + 1, :]
    pooled = _ln(cls, head_ref[67:68, :], head_ref[68:69, :], 1e-5)      # post-LN
    out_ref[0] = jnp.dot(pooled, head_ref[72:104, :],
                         preferred_element_type=F32)[:, 0:PROJ_DIM]


# ---------------- pallas_call wrappers ----------------
def _full_spec(arr):
    nd = arr.ndim
    return pl.BlockSpec(arr.shape, lambda *_, _nd=nd: (0,) * _nd)


def text_tower(input_ids, tparams):
    B = input_ids.shape[0]
    ids3 = input_ids.astype(jnp.int32)[:, :, None]               # (B, S, 1)
    out = pl.pallas_call(
        _text_tower_kernel,
        out_shape=jax.ShapeDtypeStruct((B, 1, PROJ_DIM), F32),
        grid=(B,),
        in_specs=[pl.BlockSpec((1, SEQ_T, 1), lambda b: (b, 0, 0))]
                 + [_full_spec(a) for a in tparams],
        out_specs=pl.BlockSpec((1, 1, PROJ_DIM), lambda b: (b, 0, 0)),
        compiler_params=pltpu.CompilerParams(
            dimension_semantics=("parallel",)),
    )(ids3, *tparams)
    return out.reshape(B, PROJ_DIM)


def vision_tower(patches, vparams):
    B = patches.shape[0]
    out = pl.pallas_call(
        _vision_tower_kernel,
        out_shape=jax.ShapeDtypeStruct((B, 1, PROJ_DIM), F32),
        grid=(B,),
        in_specs=[pl.BlockSpec((1, N_PATCH, CPP), lambda b: (b, 0, 0))]
                 + [_full_spec(a) for a in vparams],
        out_specs=pl.BlockSpec((1, 1, PROJ_DIM), lambda b: (b, 0, 0)),
        compiler_params=pltpu.CompilerParams(
            dimension_semantics=("parallel",)),
    )(patches, *vparams)
    return out.reshape(B, PROJ_DIM)


# ---------------- forward (mirrors clip_model.forward) ----------------
@jax.jit
def embed_texts(input_ids, packed):
    # token-embedding gather is fused inside the text kernel (one-hot matmul)
    return text_tower(input_ids, packed["text"])


@jax.jit
def embed_images(pixel_values, packed):
    # layout: NCHW, as in PyTorch; conv(stride==kernel==PATCH) -> matmul on flat patches
    B, C, Hh, Ww = pixel_values.shape
    nH, nW = Hh // PATCH, Ww // PATCH
    patches = (pixel_values.reshape(B, C, nH, PATCH, nW, PATCH)
               .transpose(0, 2, 4, 1, 3, 5)
               .reshape(B, nH * nW, CPP))
    return vision_tower(patches, packed["vision"])


def clip_forward(text_ids, image, setting, packed):
    if setting == "text":
        return embed_texts(text_ids, packed)
    elif setting == "image":
        return embed_images(image, packed)


# ---------------- deterministic parameter init ----------------
def init_params(key):
    cnt = [0]

    def nxt(shape, scale=0.02):
        cnt[0] += 1
        return scale * jax.random.normal(jax.random.fold_in(key, cnt[0]),
                                         shape, F32)

    ones = lambda s: jnp.ones(s, F32)
    zeros = lambda s: jnp.zeros(s, F32)
    p = {}

    # text embeddings
    p["tok_emb"] = nxt((VOCAB, D))
    p["t_pos_emb"] = nxt((MAX_POS, D))
    p["type_emb"] = nxt((2, D))
    p["emb_ln_g"], p["emb_ln_b"] = ones((D,)), zeros((D,))

    def attn_params(pre):
        for n in ("wq", "wk", "wv", "wo"):
            p[f"{pre}_{n}"] = nxt((D, D))
        for n in ("bq", "bk", "bv", "bo"):
            p[f"{pre}_{n}"] = zeros((D,))

    # text layers (post-LN BERT)
    for l in range(NUM_LAYERS):
        attn_params(f"t{l}_attn")
        p[f"t{l}_ln1_g"], p[f"t{l}_ln1_b"] = ones((D,)), zeros((D,))
        p[f"t{l}_w1"], p[f"t{l}_b1"] = nxt((D, MLP)), zeros((MLP,))
        p[f"t{l}_w2"], p[f"t{l}_b2"] = nxt((MLP, D)), zeros((D,))
        p[f"t{l}_ln2_g"], p[f"t{l}_ln2_b"] = ones((D,)), zeros((D,))
    p["pooler_w"], p["pooler_b"] = nxt((D, D)), zeros((D,))
    p["text_proj"] = nxt((D, PROJ_DIM))

    # vision embeddings
    p["patch_w"] = nxt((D, CHAN, PATCH, PATCH))   # PyTorch conv weight layout
    p["class_emb"] = nxt((D,))
    p["v_pos_emb"] = nxt((SEQ_V, D))
    p["pre_ln_g"], p["pre_ln_b"] = ones((D,)), zeros((D,))

    # vision layers (pre-LN CLIP ViT)
    for l in range(NUM_LAYERS):
        p[f"v{l}_ln1_g"], p[f"v{l}_ln1_b"] = ones((D,)), zeros((D,))
        attn_params(f"v{l}_attn")
        p[f"v{l}_ln2_g"], p[f"v{l}_ln2_b"] = ones((D,)), zeros((D,))
        p[f"v{l}_w1"], p[f"v{l}_b1"] = nxt((D, MLP)), zeros((MLP,))
        p[f"v{l}_w2"], p[f"v{l}_b2"] = nxt((MLP, D)), zeros((D,))
    p["post_ln_g"], p["post_ln_b"] = ones((D,)), zeros((D,))
    p["visual_proj"] = nxt((D, PROJ_DIM))
    return p


# ---------------- one-time packing into kernel-friendly slabs ----------------
def pack_params(p):
    def pad3d(v):                      # pad 1-D vector to width 3*D
        return jnp.pad(v, (0, 3 * D - v.shape[0]))

    def layer_vecs(prefix):            # (L, 8, 3D)
        slabs = []
        for l in range(NUM_LAYERS):
            bqkv = jnp.concatenate([p[f"{prefix}{l}_attn_bq"],
                                    p[f"{prefix}{l}_attn_bk"],
                                    p[f"{prefix}{l}_attn_bv"]])
            slabs.append(jnp.stack([
                bqkv,
                pad3d(p[f"{prefix}{l}_attn_bo"]),
                pad3d(p[f"{prefix}{l}_ln1_g"]), pad3d(p[f"{prefix}{l}_ln1_b"]),
                pad3d(p[f"{prefix}{l}_b1"]),
                pad3d(p[f"{prefix}{l}_b2"]),
                pad3d(p[f"{prefix}{l}_ln2_g"]), pad3d(p[f"{prefix}{l}_ln2_b"]),
            ]))
        return jnp.stack(slabs)

    def layer_wqkv(prefix):            # fused QKV weight (L, D, 3D)
        return jnp.stack([jnp.concatenate([p[f"{prefix}{l}_attn_wq"],
                                           p[f"{prefix}{l}_attn_wk"],
                                           p[f"{prefix}{l}_attn_wv"]], axis=1)
                          for l in range(NUM_LAYERS)])

    def layer_mat(fmt):
        return jnp.stack([p[fmt.format(l)] for l in range(NUM_LAYERS)])

    zrow = jnp.zeros((D,), F32)

    # ---- text head slab (80, D) ----
    pos_type = p["t_pos_emb"][:SEQ_T] + p["type_emb"][0][None, :]
    t_small = jnp.stack([p["emb_ln_g"], p["emb_ln_b"], p["pooler_b"],
                         zrow, zrow, zrow, zrow, zrow])
    t_proj = jnp.pad(p["text_proj"], ((0, 0), (0, D - PROJ_DIM)))
    thead = jnp.concatenate([pos_type, t_small, p["pooler_w"], t_proj], axis=0)

    text = (
        p["tok_emb"],
        layer_wqkv("t"), layer_mat("t{}_attn_wo"),
        layer_mat("t{}_w1"), layer_mat("t{}_w2"),
        layer_vecs("t"), thead,
    )

    # ---- vision head slab (104, D) ----
    wpatch = p["patch_w"].reshape(D, CPP).T                      # (C*P*P, D)
    posr = p["v_pos_emb"][1:]                                    # patch positions
    cls_tok = p["class_emb"] + p["v_pos_emb"][0]                 # CLS token + its pos
    v_small = jnp.stack([cls_tok, p["pre_ln_g"], p["pre_ln_b"],
                         p["post_ln_g"], p["post_ln_b"], zrow, zrow, zrow])
    v_proj = jnp.pad(p["visual_proj"], ((0, 0), (0, D - PROJ_DIM)))
    vhead = jnp.concatenate([wpatch, posr, v_small, v_proj], axis=0)

    vision = (
        layer_wqkv("v"), layer_mat("v{}_attn_wo"),
        layer_mat("v{}_w1"), layer_mat("v{}_w2"),
        layer_vecs("v"), vhead,
    )

    return {"text": text, "vision": vision}


if __name__ == "__main__":
    root = jax.random.PRNGKey(0)
    raw_params = init_params(root)
    packed = pack_params(raw_params)      # one-time packing; no per-call reshapes/casts

    k_txt, k_img = jax.random.split(jax.random.fold_in(root, 12345))
    text_ids = jax.random.randint(k_txt, (BATCH, SEQ_T), 0, VOCAB)
    image = jax.random.normal(k_img, (BATCH, CHAN, IMG, IMG), F32)

    text_emb = clip_forward(text_ids, image, "text", packed)
    image_emb = clip_forward(text_ids, image, "image", packed)
    jax.block_until_ready(text_emb)
    jax.block_until_ready(image_emb)

    assert text_emb.shape == (BATCH, PROJ_DIM), text_emb.shape
    assert image_emb.shape == (BATCH, PROJ_DIM), image_emb.shape
    assert text_emb.dtype == F32 and image_emb.dtype == F32
    assert bool(jnp.all(jnp.isfinite(text_emb))) and bool(jnp.all(jnp.isfinite(image_emb)))
    print("KERNEL_OK")
</pallas_src>

<mosaic_0001>
module attributes {stable_mosaic.version = 11 : i64} {
  func.func @_text_tower_kernel(%arg0: i32, %arg1: memref<1x8x1xi32, #tpu.memory_space<vmem>>, %arg2: memref<64x32xf32, #tpu.memory_space<vmem>>, %arg3: memref<2x32x96xf32, #tpu.memory_space<vmem>>, %arg4: memref<2x32x32xf32, #tpu.memory_space<vmem>>, %arg5: memref<2x32x64xf32, #tpu.memory_space<vmem>>, %arg6: memref<2x64x32xf32, #tpu.memory_space<vmem>>, %arg7: memref<2x8x96xf32, #tpu.memory_space<vmem>>, %arg8: memref<80x32xf32, #tpu.memory_space<vmem>>, %arg9: memref<1x1x16xf32, #tpu.memory_space<vmem>>) attributes {dimension_semantics = [#tpu.dimension_semantics<parallel>], iteration_bounds = array<i64: 2>, scalar_prefetch = 0 : i64, scratch_operands = 0 : i64, tpu.core_type = #tpu.core_type<tc>, window_params = [{transform_indices = @transform_0, window_bounds = array<i64: 1, 8, 1>}, {pipeline_mode = #tpu.pipeline_mode<synchronous>, transform_indices = @transform_1, window_bounds = array<i64: 64, 32>}, {pipeline_mode = #tpu.pipeline_mode<synchronous>, transform_indices = @transform_2, window_bounds = array<i64: 2, 32, 96>}, {pipeline_mode = #tpu.pipeline_mode<synchronous>, transform_indices = @transform_3, window_bounds = array<i64: 2, 32, 32>}, {pipeline_mode = #tpu.pipeline_mode<synchronous>, transform_indices = @transform_4, window_bounds = array<i64: 2, 32, 64>}, {pipeline_mode = #tpu.pipeline_mode<synchronous>, transform_indices = @transform_5, window_bounds = array<i64: 2, 64, 32>}, {pipeline_mode = #tpu.pipeline_mode<synchronous>, transform_indices = @transform_6, window_bounds = array<i64: 2, 8, 96>}, {pipeline_mode = #tpu.pipeline_mode<synchronous>, transform_indices = @transform_7, window_bounds = array<i64: 80, 32>}, {transform_indices = @transform_8, window_bounds = array<i64: 1, 1, 16>}]} {
    %0 = tpu.iota {dimensions = array<i32: 1>} : vector<8x64xi32>
    %c0 = arith.constant 0 : index
    %c0_0 = arith.constant 0 : index
    %c0_1 = arith.constant 0 : index
    %1 = vector.load %arg1[%c0, %c0_0, %c0_1] : memref<1x8x1xi32, #tpu.memory_space<vmem>>, vector<1x8x1xi32>
    %2 = vector.shape_cast %1 : vector<1x8x1xi32> to vector<8x1xi32>
    %3 = vector.broadcast %2 : vector<8x1xi32> to vector<8x64xi32>
    %4 = arith.cmpi eq, %3, %0 : vector<8x64xi32>
    %5 = arith.extui %4 : vector<8x64xi1> to vector<8x64xi32>
    %6 = arith.sitofp %5 : vector<8x64xi32> to vector<8x64xf32>
    %c0_2 = arith.constant 0 : index
    %c0_3 = arith.constant 0 : index
    %7 = vector.load %arg2[%c0_2, %c0_3] : memref<64x32xf32, #tpu.memory_space<vmem>>, vector<64x32xf32>
    %cst = arith.constant dense<0.000000e+00> : vector<8x32xf32>
    %8 = tpu.matmul %6, %7, %cst {dimension_numbers = #tpu.dot_dimension_numbers<[1], [0], [0], [1], [0, 0, 1, 1], [], []>} : vector<8x64xf32>, vector<64x32xf32>, vector<8x32xf32> -> vector<8x32xf32>
    %c0_4 = arith.constant 0 : index
    %c0_5 = arith.constant 0 : index
    %9 = vector.load %arg8[%c0_4, %c0_5] : memref<80x32xf32, #tpu.memory_space<vmem>>, vector<8x32xf32>
    %10 = arith.addf %8, %9 : vector<8x32xf32>
    %c8 = arith.constant 8 : index
    %c0_6 = arith.constant 0 : index
    %11 = vector.load %arg8[%c8, %c0_6] : memref<80x32xf32, #tpu.memory_space<vmem>>, vector<1x32xf32>
    %c9 = arith.constant 9 : index
    %c0_7 = arith.constant 0 : index
    %12 = vector.load %arg8[%c9, %c0_7] : memref<80x32xf32, #tpu.memory_space<vmem>>, vector<1x32xf32>
    %cst_8 = arith.constant dense<0.000000e+00> : vector<8xf32>
    %13 = vector.multi_reduction <add>, %10, %cst_8 [1] : vector<8x32xf32> to vector<8xf32>
    %14 = vector.shape_cast %13 : vector<8xf32> to vector<8x1xf32>
    %cst_9 = arith.constant 3.200000e+01 : f32
    %15 = vector.broadcast %cst_9 : f32 to vector<8x1xf32>
    %16 = arith.divf %14, %15 : vector<8x1xf32>
    %17 = vector.broadcast %16 : vector<8x1xf32> to vector<8x32xf32>
    %18 = arith.subf %10, %17 : vector<8x32xf32>
    %19 = vector.broadcast %16 : vector<8x1xf32> to vector<8x32xf32>
    %20 = arith.subf %10, %19 : vector<8x32xf32>
    %21 = arith.mulf %18, %20 : vector<8x32xf32>
    %cst_10 = arith.constant dense<0.000000e+00> : vector<8xf32>
    %22 = vector.multi_reduction <add>, %21, %cst_10 [1] : vector<8x32xf32> to vector<8xf32>
    %23 = vector.shape_cast %22 : vector<8xf32> to vector<8x1xf32>
    %cst_11 = arith.constant 3.200000e+01 : f32
    %24 = vector.broadcast %cst_11 : f32 to vector<8x1xf32>
    %25 = arith.divf %23, %24 : vector<8x1xf32>
    %26 = vector.broadcast %16 : vector<8x1xf32> to vector<8x32xf32>
    %27 = arith.subf %10, %26 : vector<8x32xf32>
    %cst_12 = arith.constant 9.99999996E-13 : f32
    %28 = vector.broadcast %cst_12 : f32 to vector<8x1xf32>
    %29 = arith.addf %25, %28 : vector<8x1xf32>
    %30 = math.rsqrt %29 : vector<8x1xf32>
    %31 = vector.broadcast %30 : vector<8x1xf32> to vector<8x32xf32>
    %32 = arith.mulf %27, %31 : vector<8x32xf32>
    %33 = vector.broadcast %11 : vector<1x32xf32> to vector<8x32xf32>
    %34 = arith.mulf %32, %33 : vector<8x32xf32>
    %35 = vector.broadcast %12 : vector<1x32xf32> to vector<8x32xf32>
    %36 = arith.addf %34, %35 : vector<8x32xf32>
    %c0_13 = arith.constant 0 : index
    %c0_14 = arith.constant 0 : index
    %c0_15 = arith.constant 0 : index
    %37 = vector.load %arg7[%c0_13, %c0_14, %c0_15] : memref<2x8x96xf32, #tpu.memory_space<vmem>>, vector<1x8x96xf32>
    %38 = vector.shape_cast %37 : vector<1x8x96xf32> to vector<8x96xf32>
    %c0_16 = arith.constant 0 : index
    %c0_17 = arith.constant 0 : index
    %c0_18 = arith.constant 0 : index
    %39 = vector.load %arg3[%c0_16, %c0_17, %c0_18] : memref<2x32x96xf32, #tpu.memory_space<vmem>>, vector<1x32x96xf32>
    %40 = vector.shape_cast %39 : vector<1x32x96xf32> to vector<32x96xf32>
    %c0_19 = arith.constant 0 : index
    %c0_20 = arith.constant 0 : index
    %c0_21 = arith.constant 0 : index
    %41 = vector.load %arg4[%c0_19, %c0_20, %c0_21] : memref<2x32x32xf32, #tpu.memory_space<vmem>>, vector<1x32x32xf32>
    %42 = vector.shape_cast %41 : vector<1x32x32xf32> to vector<32x32xf32>
    %cst_22 = arith.constant dense<0.000000e+00> : vector<8x96xf32>
    %43 = tpu.matmul %36, %40, %cst_22 {dimension_numbers = #tpu.dot_dimension_numbers<[1], [0], [0], [1], [0, 0, 1, 1], [], []>} : vector<8x32xf32>, vector<32x96xf32>, vector<8x96xf32> -> vector<8x96xf32>
    %44 = vector.extract_strided_slice %38 {offsets = [0, 0], sizes = [1, 96], strides = [1, 1]} : vector<8x96xf32> to vector<1x96xf32>
    %45 = vector.broadcast %44 : vector<1x96xf32> to vector<8x96xf32>
    %46 = arith.addf %43, %45 : vector<8x96xf32>
    %47 = vector.extract_strided_slice %38 {offsets = [1, 0], sizes = [1, 32], strides = [1, 1]} : vector<8x96xf32> to vector<1x32xf32>
    %48 = vector.extract_strided_slice %46 {offsets = [0, 0], sizes = [8, 8], strides = [1, 1]} : vector<8x96xf32> to vector<8x8xf32>
    %49 = vector.extract_strided_slice %46 {offsets = [0, 32], sizes = [8, 8], strides = [1, 1]} : vector<8x96xf32> to vector<8x8xf32>
    %50 = vector.extract_strided_slice %46 {offsets = [0, 64], sizes = [8, 8], strides = [1, 1]} : vector<8x96xf32> to vector<8x8xf32>
    %cst_23 = arith.constant dense<0.000000e+00> : vector<8x8xf32>
    %51 = tpu.matmul %48, %49, %cst_23 {dimension_numbers = #tpu.dot_dimension_numbers<[1], [1], [0], [0], [0, 0, 1, 0], [], []>} : vector<8x8xf32>, vector<8x8xf32>, vector<8x8xf32> -> vector<8x8xf32>
    %cst_24 = arith.constant 0.353553385 : f32
    %52 = vector.broadcast %cst_24 : f32 to vector<8x8xf32>
    %53 = arith.mulf %51, %52 : vector<8x8xf32>
    %cst_25 = arith.constant dense<0xFF800000> : vector<8xf32>
    %54 = vector.multi_reduction <maximumf>, %53, %cst_25 [1] : vector<8x8xf32> to vector<8xf32>
    %55 = vector.shape_cast %54 : vector<8xf32> to vector<8x1xf32>
    %56 = vector.broadcast %55 : vector<8x1xf32> to vector<8x8xf32>
    %57 = arith.subf %53, %56 : vector<8x8xf32>
    %58 = math.exp %57 : vector<8x8xf32>
    %cst_26 = arith.constant dense<0.000000e+00> : vector<8xf32>
    %59 = vector.multi_reduction <add>, %58, %cst_26 [1] : vector<8x8xf32> to vector<8xf32>
    %60 = vector.shape_cast %59 : vector<8xf32> to vector<8x1xf32>
    %61 = tpu.reciprocal %60 {approx = true} : vector<8x1xf32> -> vector<8x1xf32>
    %62 = vector.broadcast %61 : vector<8x1xf32> to vector<8x8xf32>
    %63 = arith.mulf %58, %62 : vector<8x8xf32>
    %cst_27 = arith.constant dense<0.000000e+00> : vector<8x8xf32>
    %64 = tpu.matmul %63, %50, %cst_27 {dimension_numbers = #tpu.dot_dimension_numbers<[1], [0], [0], [1], [0, 0, 1, 1], [], []>} : vector<8x8xf32>, vector<8x8xf32>, vector<8x8xf32> -> vector<8x8xf32>
    %65 = vector.extract_strided_slice %42 {offsets = [0, 0], sizes = [8, 32], strides = [1, 1]} : vector<32x32xf32> to vector<8x32xf32>
    %cst_28 = arith.constant dense<0.000000e+00> : vector<8x32xf32>
    %66 = tpu.matmul %64, %65, %cst_28 {dimension_numbers = #tpu.dot_dimension_numbers<[1], [0], [0], [1], [0, 0, 1, 1], [], []>} : vector<8x8xf32>, vector<8x32xf32>, vector<8x32xf32> -> vector<8x32xf32>
    %67 = vector.broadcast %47 : vector<1x32xf32> to vector<8x32xf32>
    %68 = arith.addf %67, %66 : vector<8x32xf32>
    %69 = vector.extract_strided_slice %46 {offsets = [0, 8], sizes = [8, 8], strides = [1, 1]} : vector<8x96xf32> to vector<8x8xf32>
    %70 = vector.extract_strided_slice %46 {offsets = [0, 40], sizes = [8, 8], strides = [1, 1]} : vector<8x96xf32> to vector<8x8xf32>
    %71 = vector.extract_strided_slice %46 {offsets = [0, 72], sizes = [8, 8], strides = [1, 1]} : vector<8x96xf32> to vector<8x8xf32>
    %cst_29 = arith.constant dense<0.000000e+00> : vector<8x8xf32>
    %72 = tpu.matmul %69, %70, %cst_29 {dimension_numbers = #tpu.dot_dimension_numbers<[1], [1], [0], [0], [0, 0, 1, 0], [], []>} : vector<8x8xf32>, vector<8x8xf32>, vector<8x8xf32> -> vector<8x8xf32>
    %cst_30 = arith.constant 0.353553385 : f32
    %73 = vector.broadcast %cst_30 : f32 to vector<8x8xf32>
    %74 = arith.mulf %72, %73 : vector<8x8xf32>
    %cst_31 = arith.constant dense<0xFF800000> : vector<8xf32>
    %75 = vector.multi_reduction <maximumf>, %74, %cst_31 [1] : vector<8x8xf32> to vector<8xf32>
    %76 = vector.shape_cast %75 : vector<8xf32> to vector<8x1xf32>
    %77 = vector.broadcast %76 : vector<8x1xf32> to vector<8x8xf32>
    %78 = arith.subf %74, %77 : vector<8x8xf32>
    %79 = math.exp %78 : vector<8x8xf32>
    %cst_32 = arith.constant dense<0.000000e+00> : vector<8xf32>
    %80 = vector.multi_reduction <add>, %79, %cst_32 [1] : vector<8x8xf32> to vector<8xf32>
    %81 = vector.shape_cast %80 : vector<8xf32> to vector<8x1xf32>
    %82 = tpu.reciprocal %81 {approx = true} : vector<8x1xf32> -> vector<8x1xf32>
    %83 = vector.broadcast %82 : vector<8x1xf32> to vector<8x8xf32>
    %84 = arith.mulf %79, %83 : vector<8x8xf32>
    %cst_33 = arith.constant dense<0.000000e+00> : vector<8x8xf32>
    %85 = tpu.matmul %84, %71, %cst_33 {dimension_numbers = #tpu.dot_dimension_numbers<[1], [0], [0], [1], [0, 0, 1, 1], [], []>} : vector<8x8xf32>, vector<8x8xf32>, vector<8x8xf32> -> vector<8x8xf32>
    %86 = vector.extract_strided_slice %42 {offsets = [8, 0], sizes = [8, 32], strides = [1, 1]} : vector<32x32xf32> to vector<8x32xf32>
    %cst_34 = arith.constant dense<0.000000e+00> : vector<8x32xf32>
    %87 = tpu.matmul %85, %86, %cst_34 {dimension_numbers = #tpu.dot_dimension_numbers<[1], [0], [0], [1], [0, 0, 1, 1], [], []>} : vector<8x8xf32>, vector<8x32xf32>, vector<8x32xf32> -> vector<8x32xf32>
    %88 = arith.addf %68, %87 : vector<8x32xf32>
    %89 = vector.extract_strided_slice %46 {offsets = [0, 16], sizes = [8, 8], strides = [1, 1]} : vector<8x96xf32> to vector<8x8xf32>
    %90 = vector.extract_strided_slice %46 {offsets = [0, 48], sizes = [8, 8], strides = [1, 1]} : vector<8x96xf32> to vector<8x8xf32>
    %91 = vector.extract_strided_slice %46 {offsets = [0, 80], sizes = [8, 8], strides = [1, 1]} : vector<8x96xf32> to vector<8x8xf32>
    %cst_35 = arith.constant dense<0.000000e+00> : vector<8x8xf32>
    %92 = tpu.matmul %89, %90, %cst_35 {dimension_numbers = #tpu.dot_dimension_numbers<[1], [1], [0], [0], [0, 0, 1, 0], [], []>} : vector<8x8xf32>, vector<8x8xf32>, vector<8x8xf32> -> vector<8x8xf32>
    %cst_36 = arith.constant 0.353553385 : f32
    %93 = vector.broadcast %cst_36 : f32 to vector<8x8xf32>
    %94 = arith.mulf %92, %93 : vector<8x8xf32>
    %cst_37 = arith.constant dense<0xFF800000> : vector<8xf32>
    %95 = vector.multi_reduction <maximumf>, %94, %cst_37 [1] : vector<8x8xf32> to vector<8xf32>
    %96 = vector.shape_cast %95 : vector<8xf32> to vector<8x1xf32>
    %97 = vector.broadcast %96 : vector<8x1xf32> to vector<8x8xf32>
    %98 = arith.subf %94, %97 : vector<8x8xf32>
    %99 = math.exp %98 : vector<8x8xf32>
    %cst_38 = arith.constant dense<0.000000e+00> : vector<8xf32>
    %100 = vector.multi_reduction <add>, %99, %cst_38 [1] : vector<8x8xf32> to vector<8xf32>
    %101 = vector.shape_cast %100 : vector<8xf32> to vector<8x1xf32>
    %102 = tpu.reciprocal %101 {approx = true} : vector<8x1xf32> -> vector<8x1xf32>
    %103 = vector.broadcast %102 : vector<8x1xf32> to vector<8x8xf32>
    %104 = arith.mulf %99, %103 : vector<8x8xf32>
    %cst_39 = arith.constant dense<0.000000e+00> : vector<8x8xf32>
    %105 = tpu.matmul %104, %91, %cst_39 {dimension_numbers = #tpu.dot_dimension_numbers<[1], [0], [0], [1], [0, 0, 1, 1], [], []>} : vector<8x8xf32>, vector<8x8xf32>, vector<8x8xf32> -> vector<8x8xf32>
    %106 = vector.extract_strided_slice %42 {offsets = [16, 0], sizes = [8, 32], strides = [1, 1]} : vector<32x32xf32> to vector<8x32xf32>
    %cst_40 = arith.constant dense<0.000000e+00> : vector<8x32xf32>
    %107 = tpu.matmul %105, %106, %cst_40 {dimension_numbers = #tpu.dot_dimension_numbers<[1], [0], [0], [1], [0, 0, 1, 1], [], []>} : vector<8x8xf32>, vector<8x32xf32>, vector<8x32xf32> -> vector<8x32xf32>
    %108 = arith.addf %88, %107 : vector<8x32xf32>
    %109 = vector.extract_strided_slice %46 {offsets = [0, 24], sizes = [8, 8], strides = [1, 1]} : vector<8x96xf32> to vector<8x8xf32>
    %110 = vector.extract_strided_slice %46 {offsets = [0, 56], sizes = [8, 8], strides = [1, 1]} : vector<8x96xf32> to vector<8x8xf32>
    %111 = vector.extract_strided_slice %46 {offsets = [0, 88], sizes = [8, 8], strides = [1, 1]} : vector<8x96xf32> to vector<8x8xf32>
    %cst_41 = arith.constant dense<0.000000e+00> : vector<8x8xf32>
    %112 = tpu.matmul %109, %110, %cst_41 {dimension_numbers = #tpu.dot_dimension_numbers<[1], [1], [0], [0], [0, 0, 1, 0], [], []>} : vector<8x8xf32>, vector<8x8xf32>, vector<8x8xf32> -> vector<8x8xf32>
    %cst_42 = arith.constant 0.353553385 : f32
    %113 = vector.broadcast %cst_42 : f32 to vector<8x8xf32>
    %114 = arith.mulf %112, %113 : vector<8x8xf32>
    %cst_43 = arith.constant dense<0xFF800000> : vector<8xf32>
    %115 = vector.multi_reduction <maximumf>, %114, %cst_43 [1] : vector<8x8xf32> to vector<8xf32>
    %116 = vector.shape_cast %115 : vector<8xf32> to vector<8x1xf32>
    %117 = vector.broadcast %116 : vector<8x1xf32> to vector<8x8xf32>
    %118 = arith.subf %114, %117 : vector<8x8xf32>
    %119 = math.exp %118 : vector<8x8xf32>
    %cst_44 = arith.constant dense<0.000000e+00> : vector<8xf32>
    %120 = vector.multi_reduction <add>, %119, %cst_44 [1] : vector<8x8xf32> to vector<8xf32>
    %121 = vector.shape_cast %120 : vector<8xf32> to vector<8x1xf32>
    %122 = tpu.reciprocal %121 {approx = true} : vector<8x1xf32> -> vector<8x1xf32>
    %123 = vector.broadcast %122 : vector<8x1xf32> to vector<8x8xf32>
    %124 = arith.mulf %119, %123 : vector<8x8xf32>
    %cst_45 = arith.constant dense<0.000000e+00> : vector<8x8xf32>
    %125 = tpu.matmul %124, %111, %cst_45 {dimension_numbers = #tpu.dot_dimension_numbers<[1], [0], [0], [1], [0, 0, 1, 1], [], []>} : vector<8x8xf32>, vector<8x8xf32>, vector<8x8xf32> -> vector<8x8xf32>
    %126 = vector.extract_strided_slice %42 {offsets = [24, 0], sizes = [8, 32], strides = [1, 1]} : vector<32x32xf32> to vector<8x32xf32>
    %cst_46 = arith.constant dense<0.000000e+00> : vector<8x32xf32>
    %127 = tpu.matmul %125, %126, %cst_46 {dimension_numbers = #tpu.dot_dimension_numbers<[1], [0], [0], [1], [0, 0, 1, 1], [], []>} : vector<8x8xf32>, vector<8x32xf32>, vector<8x32xf32> -> vector<8x32xf32>
    %128 = arith.addf %108, %127 : vector<8x32xf32>
    %129 = arith.addf %36, %128 : vector<8x32xf32>
    %130 = vector.extract_strided_slice %38 {offsets = [2, 0], sizes = [1, 32], strides = [1, 1]} : vector<8x96xf32> to vector<1x32xf32>
    %131 = vector.extract_strided_slice %38 {offsets = [3, 0], sizes = [1, 32], strides = [1, 1]} : vector<8x96xf32> to vector<1x32xf32>
    %cst_47 = arith.constant dense<0.000000e+00> : vector<8xf32>
    %132 = vector.multi_reduction <add>, %129, %cst_47 [1] : vector<8x32xf32> to vector<8xf32>
    %133 = vector.shape_cast %132 : vector<8xf32> to vector<8x1xf32>
    %cst_48 = arith.constant 3.200000e+01 : f32
    %134 = vector.broadcast %cst_48 : f32 to vector<8x1xf32>
    %135 = arith.divf %133, %134 : vector<8x1xf32>
    %136 = vector.broadcast %135 : vector<8x1xf32> to vector<8x32xf32>
    %137 = arith.subf %129, %136 : vector<8x32xf32>
    %138 = vector.broadcast %135 : vector<8x1xf32> to vector<8x32xf32>
    %139 = arith.subf %129, %138 : vector<8x32xf32>
    %140 = arith.mulf %137, %139 : vector<8x32xf32>
    %cst_49 = arith.constant dense<0.000000e+00> : vector<8xf32>
    %141 = vector.multi_reduction <add>, %140, %cst_49 [1] : vector<8x32xf32> to vector<8xf32>
    %142 = vector.shape_cast %141 : vector<8xf32> to vector<8x1xf32>
    %cst_50 = arith.constant 3.200000e+01 : f32
    %143 = vector.broadcast %cst_50 : f32 to vector<8x1xf32>
    %144 = arith.divf %142, %143 : vector<8x1xf32>
    %145 = vector.broadcast %135 : vector<8x1xf32> to vector<8x32xf32>
    %146 = arith.subf %129, %145 : vector<8x32xf32>
    %cst_51 = arith.constant 9.99999996E-13 : f32
    %147 = vector.broadcast %cst_51 : f32 to vector<8x1xf32>
    %148 = arith.addf %144, %147 : vector<8x1xf32>
    %149 = math.rsqrt %148 : vector<8x1xf32>
    %150 = vector.broadcast %149 : vector<8x1xf32> to vector<8x32xf32>
    %151 = arith.mulf %146, %150 : vector<8x32xf32>
    %152 = vector.broadcast %130 : vector<1x32xf32> to vector<8x32xf32>
    %153 = arith.mulf %151, %152 : vector<8x32xf32>
    %154 = vector.broadcast %131 : vector<1x32xf32> to vector<8x32xf32>
    %155 = arith.addf %153, %154 : vector<8x32xf32>
    %c0_52 = arith.constant 0 : index
    %c0_53 = arith.constant 0 : index
    %c0_54 = arith.constant 0 : index
    %156 = vector.load %arg5[%c0_52, %c0_53, %c0_54] : memref<2x32x64xf32, #tpu.memory_space<vmem>>, vector<1x32x64xf32>
    %157 = vector.shape_cast %156 : vector<1x32x64xf32> to vector<32x64xf32>
    %cst_55 = arith.constant dense<0.000000e+00> : vector<8x64xf32>
    %158 = tpu.matmul %155, %157, %cst_55 {dimension_numbers = #tpu.dot_dimension_numbers<[1], [0], [0], [1], [0, 0, 1, 1], [], []>} : vector<8x32xf32>, vector<32x64xf32>, vector<8x64xf32> -> vector<8x64xf32>
    %159 = vector.extract_strided_slice %38 {offsets = [4, 0], sizes = [1, 64], strides = [1, 1]} : vector<8x96xf32> to vector<1x64xf32>
    %160 = vector.broadcast %159 : vector<1x64xf32> to vector<8x64xf32>
    %161 = arith.addf %158, %160 : vector<8x64xf32>
    %cst_56 = arith.constant 5.000000e-01 : f32
    %162 = vector.broadcast %cst_56 : f32 to vector<8x64xf32>
    %163 = arith.mulf %162, %161 : vector<8x64xf32>
    %cst_57 = arith.constant 4.471500e-02 : f32
    %164 = vector.broadcast %cst_57 : f32 to vector<8x64xf32>
    %165 = arith.mulf %164, %161 : vector<8x64xf32>
    %166 = arith.mulf %165, %161 : vector<8x64xf32>
    %167 = arith.mulf %166, %161 : vector<8x64xf32>
    %168 = arith.addf %161, %167 : vector<8x64xf32>
    %cst_58 = arith.constant 0.797884583 : f32
    %169 = vector.broadcast %cst_58 : f32 to vector<8x64xf32>
    %170 = arith.mulf %169, %168 : vector<8x64xf32>
    %171 = math.tanh %170 : vector<8x64xf32>
    %cst_59 = arith.constant 1.000000e+00 : f32
    %172 = vector.broadcast %cst_59 : f32 to vector<8x64xf32>
    %173 = arith.addf %172, %171 : vector<8x64xf32>
    %174 = arith.mulf %163, %173 : vector<8x64xf32>
    %c0_60 = arith.constant 0 : index
    %c0_61 = arith.constant 0 : index
    %c0_62 = arith.constant 0 : index
    %175 = vector.load %arg6[%c0_60, %c0_61, %c0_62] : memref<2x64x32xf32, #tpu.memory_space<vmem>>, vector<1x64x32xf32>
    %176 = vector.shape_cast %175 : vector<1x64x32xf32> to vector<64x32xf32>
    %cst_63 = arith.constant dense<0.000000e+00> : vector<8x32xf32>
    %177 = tpu.matmul %174, %176, %cst_63 {dimension_numbers = #tpu.dot_dimension_numbers<[1], [0], [0], [1], [0, 0, 1, 1], [], []>} : vector<8x64xf32>, vector<64x32xf32>, vector<8x32xf32> -> vector<8x32xf32>
    %178 = vector.extract_strided_slice %38 {offsets = [5, 0], sizes = [1, 32], strides = [1, 1]} : vector<8x96xf32> to vector<1x32xf32>
    %179 = vector.broadcast %178 : vector<1x32xf32> to vector<8x32xf32>
    %180 = arith.addf %177, %179 : vector<8x32xf32>
    %181 = arith.addf %155, %180 : vector<8x32xf32>
    %182 = vector.extract_strided_slice %38 {offsets = [6, 0], sizes = [1, 32], strides = [1, 1]} : vector<8x96xf32> to vector<1x32xf32>
    %183 = vector.extract_strided_slice %38 {offsets = [7, 0], sizes = [1, 32], strides = [1, 1]} : vector<8x96xf32> to vector<1x32xf32>
    %cst_64 = arith.constant dense<0.000000e+00> : vector<8xf32>
    %184 = vector.multi_reduction <add>, %181, %cst_64 [1] : vector<8x32xf32> to vector<8xf32>
    %185 = vector.shape_cast %184 : vector<8xf32> to vector<8x1xf32>
    %cst_65 = arith.constant 3.200000e+01 : f32
    %186 = vector.broadcast %cst_65 : f32 to vector<8x1xf32>
    %187 = arith.divf %185, %186 : vector<8x1xf32>
    %188 = vector.broadcast %187 : vector<8x1xf32> to vector<8x32xf32>
    %189 = arith.subf %181, %188 : vector<8x32xf32>
    %190 = vector.broadcast %187 : vector<8x1xf32> to vector<8x32xf32>
    %191 = arith.subf %181, %190 : vector<8x32xf32>
    %192 = arith.mulf %189, %191 : vector<8x32xf32>
    %cst_66 = arith.constant dense<0.000000e+00> : vector<8xf32>
    %193 = vector.multi_reduction <add>, %192, %cst_66 [1] : vector<8x32xf32> to vector<8xf32>
    %194 = vector.shape_cast %193 : vector<8xf32> to vector<8x1xf32>
    %cst_67 = arith.constant 3.200000e+01 : f32
    %195 = vector.broadcast %cst_67 : f32 to vector<8x1xf32>
    %196 = arith.divf %194, %195 : vector<8x1xf32>
    %197 = vector.broadcast %187 : vector<8x1xf32> to vector<8x32xf32>
    %198 = arith.subf %181, %197 : vector<8x32xf32>
    %cst_68 = arith.constant 9.99999996E-13 : f32
    %199 = vector.broadcast %cst_68 : f32 to vector<8x1xf32>
    %200 = arith.addf %196, %199 : vector<8x1xf32>
    %201 = math.rsqrt %200 : vector<8x1xf32>
    %202 = vector.broadcast %201 : vector<8x1xf32> to vector<8x32xf32>
    %203 = arith.mulf %198, %202 : vector<8x32xf32>
    %204 = vector.broadcast %182 : vector<1x32xf32> to vector<8x32xf32>
    %205 = arith.mulf %203, %204 : vector<8x32xf32>
    %206 = vector.broadcast %183 : vector<1x32xf32> to vector<8x32xf32>
    %207 = arith.addf %205, %206 : vector<8x32xf32>
    %c1 = arith.constant 1 : index
    %c0_69 = arith.constant 0 : index
    %c0_70 = arith.constant 0 : index
    %208 = vector.load %arg7[%c1, %c0_69, %c0_70] : memref<2x8x96xf32, #tpu.memory_space<vmem>>, vector<1x8x96xf32>
    %209 = vector.shape_cast %208 : vector<1x8x96xf32> to vector<8x96xf32>
    %c1_71 = arith.constant 1 : index
    %c0_72 = arith.constant 0 : index
    %c0_73 = arith.constant 0 : index
    %210 = vector.load %arg3[%c1_71, %c0_72, %c0_73] : memref<2x32x96xf32, #tpu.memory_space<vmem>>, vector<1x32x96xf32>
    %211 = vector.shape_cast %210 : vector<1x32x96xf32> to vector<32x96xf32>
    %c1_74 = arith.constant 1 : index
    %c0_75 = arith.constant 0 : index
    %c0_76 = arith.constant 0 : index
    %212 = vector.load %arg4[%c1_74, %c0_75, %c0_76] : memref<2x32x32xf32, #tpu.memory_space<vmem>>, vector<1x32x32xf32>
    %213 = vector.shape_cast %212 : vector<1x32x32xf32> to vector<32x32xf32>
    %cst_77 = arith.constant dense<0.000000e+00> : vector<8x96xf32>
    %214 = tpu.matmul %207, %211, %cst_77 {dimension_numbers = #tpu.dot_dimension_numbers<[1], [0], [0], [1], [0, 0, 1, 1], [], []>} : vector<8x32xf32>, vector<32x96xf32>, vector<8x96xf32> -> vector<8x96xf32>
    %215 = vector.extract_strided_slice %209 {offsets = [0, 0], sizes = [1, 96], strides = [1, 1]} : vector<8x96xf32> to vector<1x96xf32>
    %216 = vector.broadcast %215 : vector<1x96xf32> to vector<8x96xf32>
    %217 = arith.addf %214, %216 : vector<8x96xf32>
    %218 = vector.extract_strided_slice %209 {offsets = [1, 0], sizes = [1, 32], strides = [1, 1]} : vector<8x96xf32> to vector<1x32xf32>
    %219 = vector.extract_strided_slice %217 {offsets = [0, 0], sizes = [8, 8], strides = [1, 1]} : vector<8x96xf32> to vector<8x8xf32>
    %220 = vector.extract_strided_slice %217 {offsets = [0, 32], sizes = [8, 8], strides = [1, 1]} : vector<8x96xf32> to vector<8x8xf32>
    %221 = vector.extract_strided_slice %217 {offsets = [0, 64], sizes = [8, 8], strides = [1, 1]} : vector<8x96xf32> to vector<8x8xf32>
    %cst_78 = arith.constant dense<0.000000e+00> : vector<8x8xf32>
    %222 = tpu.matmul %219, %220, %cst_78 {dimension_numbers = #tpu.dot_dimension_numbers<[1], [1], [0], [0], [0, 0, 1, 0], [], []>} : vector<8x8xf32>, vector<8x8xf32>, vector<8x8xf32> -> vector<8x8xf32>
    %cst_79 = arith.constant 0.353553385 : f32
    %223 = vector.broadcast %cst_79 : f32 to vector<8x8xf32>
    %224 = arith.mulf %222, %223 : vector<8x8xf32>
    %cst_80 = arith.constant dense<0xFF800000> : vector<8xf32>
    %225 = vector.multi_reduction <maximumf>, %224, %cst_80 [1] : vector<8x8xf32> to vector<8xf32>
    %226 = vector.shape_cast %225 : vector<8xf32> to vector<8x1xf32>
    %227 = vector.broadcast %226 : vector<8x1xf32> to vector<8x8xf32>
    %228 = arith.subf %224, %227 : vector<8x8xf32>
    %229 = math.exp %228 : vector<8x8xf32>
    %cst_81 = arith.constant dense<0.000000e+00> : vector<8xf32>
    %230 = vector.multi_reduction <add>, %229, %cst_81 [1] : vector<8x8xf32> to vector<8xf32>
    %231 = vector.shape_cast %230 : vector<8xf32> to vector<8x1xf32>
    %232 = tpu.reciprocal %231 {approx = true} : vector<8x1xf32> -> vector<8x1xf32>
    %233 = vector.broadcast %232 : vector<8x1xf32> to vector<8x8xf32>
    %234 = arith.mulf %229, %233 : vector<8x8xf32>
    %cst_82 = arith.constant dense<0.000000e+00> : vector<8x8xf32>
    %235 = tpu.matmul %234, %221, %cst_82 {dimension_numbers = #tpu.dot_dimension_numbers<[1], [0], [0], [1], [0, 0, 1, 1], [], []>} : vector<8x8xf32>, vector<8x8xf32>, vector<8x8xf32> -> vector<8x8xf32>
    %236 = vector.extract_strided_slice %213 {offsets = [0, 0], sizes = [8, 32], strides = [1, 1]} : vector<32x32xf32> to vector<8x32xf32>
    %cst_83 = arith.constant dense<0.000000e+00> : vector<8x32xf32>
    %237 = tpu.matmul %235, %236, %cst_83 {dimension_numbers = #tpu.dot_dimension_numbers<[1], [0], [0], [1], [0, 0, 1, 1], [], []>} : vector<8x8xf32>, vector<8x32xf32>, vector<8x32xf32> -> vector<8x32xf32>
    %238 = vector.broadcast %218 : vector<1x32xf32> to vector<8x32xf32>
    %239 = arith.addf %238, %237 : vector<8x32xf32>
    %240 = vector.extract_strided_slice %217 {offsets = [0, 8], sizes = [8, 8], strides = [1, 1]} : vector<8x96xf32> to vector<8x8xf32>
    %241 = vector.extract_strided_slice %217 {offsets = [0, 40], sizes = [8, 8], strides = [1, 1]} : vector<8x96xf32> to vector<8x8xf32>
    %242 = vector.extract_strided_slice %217 {offsets = [0, 72], sizes = [8, 8], strides = [1, 1]} : vector<8x96xf32> to vector<8x8xf32>
    %cst_84 = arith.constant dense<0.000000e+00> : vector<8x8xf32>
    %243 = tpu.matmul %240, %241, %cst_84 {dimension_numbers = #tpu.dot_dimension_numbers<[1], [1], [0], [0], [0, 0, 1, 0], [], []>} : vector<8x8xf32>, vector<8x8xf32>, vector<8x8xf32> -> vector<8x8xf32>
    %cst_85 = arith.constant 0.353553385 : f32
    %244 = vector.broadcast %cst_85 : f32 to vector<8x8xf32>
    %245 = arith.mulf %243, %244 : vector<8x8xf32>
    %cst_86 = arith.constant dense<0xFF800000> : vector<8xf32>
    %246 = vector.multi_reduction <maximumf>, %245, %cst_86 [1] : vector<8x8xf32> to vector<8xf32>
    %247 = vector.shape_cast %246 : vector<8xf32> to vector<8x1xf32>
    %248 = vector.broadcast %247 : vector<8x1xf32> to vector<8x8xf32>
    %249 = arith.subf %245, %248 : vector<8x8xf32>
    %250 = math.exp %249 : vector<8x8xf32>
    %cst_87 = arith.constant dense<0.000000e+00> : vector<8xf32>
    %251 = vector.multi_reduction <add>, %250, %cst_87 [1] : vector<8x8xf32> to vector<8xf32>
    %252 = vector.shape_cast %251 : vector<8xf32> to vector<8x1xf32>
    %253 = tpu.reciprocal %252 {approx = true} : vector<8x1xf32> -> vector<8x1xf32>
    %254 = vector.broadcast %253 : vector<8x1xf32> to vector<8x8xf32>
    %255 = arith.mulf %250, %254 : vector<8x8xf32>
    %cst_88 = arith.constant dense<0.000000e+00> : vector<8x8xf32>
    %256 = tpu.matmul %255, %242, %cst_88 {dimension_numbers = #tpu.dot_dimension_numbers<[1], [0], [0], [1], [0, 0, 1, 1], [], []>} : vector<8x8xf32>, vector<8x8xf32>, vector<8x8xf32> -> vector<8x8xf32>
    %257 = vector.extract_strided_slice %213 {offsets = [8, 0], sizes = [8, 32], strides = [1, 1]} : vector<32x32xf32> to vector<8x32xf32>
    %cst_89 = arith.constant dense<0.000000e+00> : vector<8x32xf32>
    %258 = tpu.matmul %256, %257, %cst_89 {dimension_numbers = #tpu.dot_dimension_numbers<[1], [0], [0], [1], [0, 0, 1, 1], [], []>} : vector<8x8xf32>, vector<8x32xf32>, vector<8x32xf32> -> vector<8x32xf32>
    %259 = arith.addf %239, %258 : vector<8x32xf32>
    %260 = vector.extract_strided_slice %217 {offsets = [0, 16], sizes = [8, 8], strides = [1, 1]} : vector<8x96xf32> to vector<8x8xf32>
    %261 = vector.extract_strided_slice %217 {offsets = [0, 48], sizes = [8, 8], strides = [1, 1]} : vector<8x96xf32> to vector<8x8xf32>
    %262 = vector.extract_strided_slice %217 {offsets = [0, 80], sizes = [8, 8], strides = [1, 1]} : vector<8x96xf32> to vector<8x8xf32>
    %cst_90 = arith.constant dense<0.000000e+00> : vector<8x8xf32>
    %263 = tpu.matmul %260, %261, %cst_90 {dimension_numbers = #tpu.dot_dimension_numbers<[1], [1], [0], [0], [0, 0, 1, 0], [], []>} : vector<8x8xf32>, vector<8x8xf32>, vector<8x8xf32> -> vector<8x8xf32>
    %cst_91 = arith.constant 0.353553385 : f32
    %264 = vector.broadcast %cst_91 : f32 to vector<8x8xf32>
    %265 = arith.mulf %263, %264 : vector<8x8xf32>
    %cst_92 = arith.constant dense<0xFF800000> : vector<8xf32>
    %266 = vector.multi_reduction <maximumf>, %265, %cst_92 [1] : vector<8x8xf32> to vector<8xf32>
    %267 = vector.shape_cast %266 : vector<8xf32> to vector<8x1xf32>
    %268 = vector.broadcast %267 : vector<8x1xf32> to vector<8x8xf32>
    %269 = arith.subf %265, %268 : vector<8x8xf32>
    %270 = math.exp %269 : vector<8x8xf32>
    %cst_93 = arith.constant dense<0.000000e+00> : vector<8xf32>
    %271 = vector.multi_reduction <add>, %270, %cst_93 [1] : vector<8x8xf32> to vector<8xf32>
    %272 = vector.shape_cast %271 : vector<8xf32> to vector<8x1xf32>
    %273 = tpu.reciprocal %272 {approx = true} : vector<8x1xf32> -> vector<8x1xf32>
    %274 = vector.broadcast %273 : vector<8x1xf32> to vector<8x8xf32>
    %275 = arith.mulf %270, %274 : vector<8x8xf32>
    %cst_94 = arith.constant dense<0.000000e+00> : vector<8x8xf32>
    %276 = tpu.matmul %275, %262, %cst_94 {dimension_numbers = #tpu.dot_dimension_numbers<[1], [0], [0], [1], [0, 0, 1, 1], [], []>} : vector<8x8xf32>, vector<8x8xf32>, vector<8x8xf32> -> vector<8x8xf32>
    %277 = vector.extract_strided_slice %213 {offsets = [16, 0], sizes = [8, 32], strides = [1, 1]} : vector<32x32xf32> to vector<8x32xf32>
    %cst_95 = arith.constant dense<0.000000e+00> : vector<8x32xf32>
    %278 = tpu.matmul %276, %277, %cst_95 {dimension_numbers = #tpu.dot_dimension_numbers<[1], [0], [0], [1], [0, 0, 1, 1], [], []>} : vector<8x8xf32>, vector<8x32xf32>, vector<8x32xf32> -> vector<8x32xf32>
    %279 = arith.addf %259, %278 : vector<8x32xf32>
    %280 = vector.extract_strided_slice %217 {offsets = [0, 24], sizes = [8, 8], strides = [1, 1]} : vector<8x96xf32> to vector<8x8xf32>
    %281 = vector.extract_strided_slice %217 {offsets = [0, 56], sizes = [8, 8], strides = [1, 1]} : vector<8x96xf32> to vector<8x8xf32>
    %282 = vector.extract_strided_slice %217 {offsets = [0, 88], sizes = [8, 8], strides = [1, 1]} : vector<8x96xf32> to vector<8x8xf32>
    %cst_96 = arith.constant dense<0.000000e+00> : vector<8x8xf32>
    %283 = tpu.matmul %280, %281, %cst_96 {dimension_numbers = #tpu.dot_dimension_numbers<[1], [1], [0], [0], [0, 0, 1, 0], [], []>} : vector<8x8xf32>, vector<8x8xf32>, vector<8x8xf32> -> vector<8x8xf32>
    %cst_97 = arith.constant 0.353553385 : f32
    %284 = vector.broadcast %cst_97 : f32 to vector<8x8xf32>
    %285 = arith.mulf %283, %284 : vector<8x8xf32>
    %cst_98 = arith.constant dense<0xFF800000> : vector<8xf32>
    %286 = vector.multi_reduction <maximumf>, %285, %cst_98 [1] : vector<8x8xf32> to vector<8xf32>
    %287 = vector.shape_cast %286 : vector<8xf32> to vector<8x1xf32>
    %288 = vector.broadcast %287 : vector<8x1xf32> to vector<8x8xf32>
    %289 = arith.subf %285, %288 : vector<8x8xf32>
    %290 = math.exp %289 : vector<8x8xf32>
    %cst_99 = arith.constant dense<0.000000e+00> : vector<8xf32>
    %291 = vector.multi_reduction <add>, %290, %cst_99 [1] : vector<8x8xf32> to vector<8xf32>
    %292 = vector.shape_cast %291 : vector<8xf32> to vector<8x1xf32>
    %293 = tpu.reciprocal %292 {approx = true} : vector<8x1xf32> -> vector<8x1xf32>
    %294 = vector.broadcast %293 : vector<8x1xf32> to vector<8x8xf32>
    %295 = arith.mulf %290, %294 : vector<8x8xf32>
    %cst_100 = arith.constant dense<0.000000e+00> : vector<8x8xf32>
    %296 = tpu.matmul %295, %282, %cst_100 {dimension_numbers = #tpu.dot_dimension_numbers<[1], [0], [0], [1], [0, 0, 1, 1], [], []>} : vector<8x8xf32>, vector<8x8xf32>, vector<8x8xf32> -> vector<8x8xf32>
    %297 = vector.extract_strided_slice %213 {offsets = [24, 0], sizes = [8, 32], strides = [1, 1]} : vector<32x32xf32> to vector<8x32xf32>
    %cst_101 = arith.constant dense<0.000000e+00> : vector<8x32xf32>
    %298 = tpu.matmul %296, %297, %cst_101 {dimension_numbers = #tpu.dot_dimension_numbers<[1], [0], [0], [1], [0, 0, 1, 1], [], []>} : vector<8x8xf32>, vector<8x32xf32>, vector<8x32xf32> -> vector<8x32xf32>
    %299 = arith.addf %279, %298 : vector<8x32xf32>
    %300 = arith.addf %207, %299 : vector<8x32xf32>
    %301 = vector.extract_strided_slice %209 {offsets = [2, 0], sizes = [1, 32], strides = [1, 1]} : vector<8x96xf32> to vector<1x32xf32>
    %302 = vector.extract_strided_slice %209 {offsets = [3, 0], sizes = [1, 32], strides = [1, 1]} : vector<8x96xf32> to vector<1x32xf32>
    %cst_102 = arith.constant dense<0.000000e+00> : vector<8xf32>
    %303 = vector.multi_reduction <add>, %300, %cst_102 [1] : vector<8x32xf32> to vector<8xf32>
    %304 = vector.shape_cast %303 : vector<8xf32> to vector<8x1xf32>
    %cst_103 = arith.constant 3.200000e+01 : f32
    %305 = vector.broadcast %cst_103 : f32 to vector<8x1xf32>
    %306 = arith.divf %304, %305 : vector<8x1xf32>
    %307 = vector.broadcast %306 : vector<8x1xf32> to vector<8x32xf32>
    %308 = arith.subf %300, %307 : vector<8x32xf32>
    %309 = vector.broadcast %306 : vector<8x1xf32> to vector<8x32xf32>
    %310 = arith.subf %300, %309 : vector<8x32xf32>
    %311 = arith.mulf %308, %310 : vector<8x32xf32>
    %cst_104 = arith.constant dense<0.000000e+00> : vector<8xf32>
    %312 = vector.multi_reduction <add>, %311, %cst_104 [1] : vector<8x32xf32> to vector<8xf32>
    %313 = vector.shape_cast %312 : vector<8xf32> to vector<8x1xf32>
    %cst_105 = arith.constant 3.200000e+01 : f32
    %314 = vector.broadcast %cst_105 : f32 to vector<8x1xf32>
    %315 = arith.divf %313, %314 : vector<8x1xf32>
    %316 = vector.broadcast %306 : vector<8x1xf32> to vector<8x32xf32>
    %317 = arith.subf %300, %316 : vector<8x32xf32>
    %cst_106 = arith.constant 9.99999996E-13 : f32
    %318 = vector.broadcast %cst_106 : f32 to vector<8x1xf32>
    %319 = arith.addf %315, %318 : vector<8x1xf32>
    %320 = math.rsqrt %319 : vector<8x1xf32>
    %321 = vector.broadcast %320 : vector<8x1xf32> to vector<8x32xf32>
    %322 = arith.mulf %317, %321 : vector<8x32xf32>
    %323 = vector.broadcast %301 : vector<1x32xf32> to vector<8x32xf32>
    %324 = arith.mulf %322, %323 : vector<8x32xf32>
    %325 = vector.broadcast %302 : vector<1x32xf32> to vector<8x32xf32>
    %326 = arith.addf %324, %325 : vector<8x32xf32>
    %c1_107 = arith.constant 1 : index
    %c0_108 = arith.constant 0 : index
    %c0_109 = arith.constant 0 : index
    %327 = vector.load %arg5[%c1_107, %c0_108, %c0_109] : memref<2x32x64xf32, #tpu.memory_space<vmem>>, vector<1x32x64xf32>
    %328 = vector.shape_cast %327 : vector<1x32x64xf32> to vector<32x64xf32>
    %cst_110 = arith.constant dense<0.000000e+00> : vector<8x64xf32>
    %329 = tpu.matmul %326, %328, %cst_110 {dimension_numbers = #tpu.dot_dimension_numbers<[1], [0], [0], [1], [0, 0, 1, 1], [], []>} : vector<8x32xf32>, vector<32x64xf32>, vector<8x64xf32> -> vector<8x64xf32>
    %330 = vector.extract_strided_slice %209 {offsets = [4, 0], sizes = [1, 64], strides = [1, 1]} : vector<8x96xf32> to vector<1x64xf32>
    %331 = vector.broadcast %330 : vector<1x64xf32> to vector<8x64xf32>
    %332 = arith.addf %329, %331 : vector<8x64xf32>
    %cst_111 = arith.constant 5.000000e-01 : f32
    %333 = vector.broadcast %cst_111 : f32 to vector<8x64xf32>
    %334 = arith.mulf %333, %332 : vector<8x64xf32>
    %cst_112 = arith.constant 4.471500e-02 : f32
    %335 = vector.broadcast %cst_112 : f32 to vector<8x64xf32>
    %336 = arith.mulf %335, %332 : vector<8x64xf32>
    %337 = arith.mulf %336, %332 : vector<8x64xf32>
    %338 = arith.mulf %337, %332 : vector<8x64xf32>
    %339 = arith.addf %332, %338 : vector<8x64xf32>
    %cst_113 = arith.constant 0.797884583 : f32
    %340 = vector.broadcast %cst_113 : f32 to vector<8x64xf32>
    %341 = arith.mulf %340, %339 : vector<8x64xf32>
    %342 = math.tanh %341 : vector<8x64xf32>
    %cst_114 = arith.constant 1.000000e+00 : f32
    %343 = vector.broadcast %cst_114 : f32 to vector<8x64xf32>
    %344 = arith.addf %343, %342 : vector<8x64xf32>
    %345 = arith.mulf %334, %344 : vector<8x64xf32>
    %c1_115 = arith.constant 1 : index
    %c0_116 = arith.constant 0 : index
    %c0_117 = arith.constant 0 : index
    %346 = vector.load %arg6[%c1_115, %c0_116, %c0_117] : memref<2x64x32xf32, #tpu.memory_space<vmem>>, vector<1x64x32xf32>
    %347 = vector.shape_cast %346 : vector<1x64x32xf32> to vector<64x32xf32>
    %cst_118 = arith.constant dense<0.000000e+00> : vector<8x32xf32>
    %348 = tpu.matmul %345, %347, %cst_118 {dimension_numbers = #tpu.dot_dimension_numbers<[1], [0], [0], [1], [0, 0, 1, 1], [], []>} : vector<8x64xf32>, vector<64x32xf32>, vector<8x32xf32> -> vector<8x32xf32>
    %349 = vector.extract_strided_slice %209 {offsets = [5, 0], sizes = [1, 32], strides = [1, 1]} : vector<8x96xf32> to vector<1x32xf32>
    %350 = vector.broadcast %349 : vector<1x32xf32> to vector<8x32xf32>
    %351 = arith.addf %348, %350 : vector<8x32xf32>
    %352 = arith.addf %326, %351 : vector<8x32xf32>
    %353 = vector.extract_strided_slice %209 {offsets = [6, 0], sizes = [1, 32], strides = [1, 1]} : vector<8x96xf32> to vector<1x32xf32>
    %354 = vector.extract_strided_slice %209 {offsets = [7, 0], sizes = [1, 32], strides = [1, 1]} : vector<8x96xf32> to vector<1x32xf32>
    %cst_119 = arith.constant dense<0.000000e+00> : vector<8xf32>
    %355 = vector.multi_reduction <add>, %352, %cst_119 [1] : vector<8x32xf32> to vector<8xf32>
    %356 = vector.shape_cast %355 : vector<8xf32> to vector<8x1xf32>
    %cst_120 = arith.constant 3.200000e+01 : f32
    %357 = vector.broadcast %cst_120 : f32 to vector<8x1xf32>
    %358 = arith.divf %356, %357 : vector<8x1xf32>
    %359 = vector.broadcast %358 : vector<8x1xf32> to vector<8x32xf32>
    %360 = arith.subf %352, %359 : vector<8x32xf32>
    %361 = vector.broadcast %358 : vector<8x1xf32> to vector<8x32xf32>
    %362 = arith.subf %352, %361 : vector<8x32xf32>
    %363 = arith.mulf %360, %362 : vector<8x32xf32>
    %cst_121 = arith.constant dense<0.000000e+00> : vector<8xf32>
    %364 = vector.multi_reduction <add>, %363, %cst_121 [1] : vector<8x32xf32> to vector<8xf32>
    %365 = vector.shape_cast %364 : vector<8xf32> to vector<8x1xf32>
    %cst_122 = arith.constant 3.200000e+01 : f32
    %366 = vector.broadcast %cst_122 : f32 to vector<8x1xf32>
    %367 = arith.divf %365, %366 : vector<8x1xf32>
    %368 = vector.broadcast %358 : vector<8x1xf32> to vector<8x32xf32>
    %369 = arith.subf %352, %368 : vector<8x32xf32>
    %cst_123 = arith.constant 9.99999996E-13 : f32
    %370 = vector.broadcast %cst_123 : f32 to vector<8x1xf32>
    %371 = arith.addf %367, %370 : vector<8x1xf32>
    %372 = math.rsqrt %371 : vector<8x1xf32>
    %373 = vector.broadcast %372 : vector<8x1xf32> to vector<8x32xf32>
    %374 = arith.mulf %369, %373 : vector<8x32xf32>
    %375 = vector.broadcast %353 : vector<1x32xf32> to vector<8x32xf32>
    %376 = arith.mulf %374, %375 : vector<8x32xf32>
    %377 = vector.broadcast %354 : vector<1x32xf32> to vector<8x32xf32>
    %378 = arith.addf %376, %377 : vector<8x32xf32>
    %379 = vector.extract_strided_slice %378 {offsets = [0, 0], sizes = [1, 32], strides = [1, 1]} : vector<8x32xf32> to vector<1x32xf32>
    %c16 = arith.constant 16 : index
    %c0_124 = arith.constant 0 : index
    %380 = vector.load %arg8[%c16, %c0_124] : memref<80x32xf32, #tpu.memory_space<vmem>>, vector<32x32xf32>
    %cst_125 = arith.constant dense<0.000000e+00> : vector<1x32xf32>
    %381 = tpu.matmul %379, %380, %cst_125 {dimension_numbers = #tpu.dot_dimension_numbers<[1], [0], [0], [1], [0, 0, 1, 1], [], []>} : vector<1x32xf32>, vector<32x32xf32>, vector<1x32xf32> -> vector<1x32xf32>
    %c10 = arith.constant 10 : index
    %c0_126 = arith.constant 0 : index
    %382 = vector.load %arg8[%c10, %c0_126] : memref<80x32xf32, #tpu.memory_space<vmem>>, vector<1x32xf32>
    %383 = arith.addf %381, %382 : vector<1x32xf32>
    %384 = math.tanh %383 : vector<1x32xf32>
    %c48 = arith.constant 48 : index
    %c0_127 = arith.constant 0 : index
    %385 = vector.load %arg8[%c48, %c0_127] : memref<80x32xf32, #tpu.memory_space<vmem>>, vector<32x32xf32>
    %cst_128 = arith.constant dense<0.000000e+00> : vector<1x32xf32>
    %386 = tpu.matmul %384, %385, %cst_128 {dimension_numbers = #tpu.dot_dimension_numbers<[1], [0], [0], [1], [0, 0, 1, 1], [], []>} : vector<1x32xf32>, vector<32x32xf32>, vector<1x32xf32> -> vector<1x32xf32>
    %387 = vector.extract_strided_slice %386 {offsets = [0, 0], sizes = [1, 16], strides = [1, 1]} : vector<1x32xf32> to vector<1x16xf32>
    %c0_129 = arith.constant 0 : index
    %c0_130 = arith.constant 0 : index
    %c0_131 = arith.constant 0 : index
    %388 = vector.load %arg9[%c0_129, %c0_130, %c0_131] : memref<1x1x16xf32, #tpu.memory_space<vmem>>, vector<1x1x16xf32>
    %389 = vector.shape_cast %388 : vector<1x1x16xf32> to vector<1x16xf32>
    %390 = vector.shape_cast %387 : vector<1x16xf32> to vector<1x1x16xf32>
    tpu.vector_store %arg9[%c0_129, %c0_130, %c0_131], %390 {strides = array<i32>} : memref<1x1x16xf32, #tpu.memory_space<vmem>>, vector<1x1x16xf32>,
    return
  }
  func.func @transform_0(%arg0: i32) -> (i32, i32, i32) {
    %c0_i32 = arith.constant 0 : i32
    %c0_i32_0 = arith.constant 0 : i32
    %c0_i32_1 = arith.constant 0 : i32
    return %arg0, %c0_i32, %c0_i32_0 : i32, i32, i32
  }
  func.func @transform_1(%arg0: i32) -> (i32, i32) {
    %c0_i32 = arith.constant 0 : i32
    %c0_i32_0 = arith.constant 0 : i32
    %c0_i32_1 = arith.constant 0 : i32
    return %c0_i32, %c0_i32_0 : i32, i32
  }
  func.func @transform_2(%arg0: i32) -> (i32, i32, i32) {
    %c0_i32 = arith.constant 0 : i32
    %c0_i32_0 = arith.constant 0 : i32
    %c0_i32_1 = arith.constant 0 : i32
    %c0_i32_2 = arith.constant 0 : i32
    return %c0_i32, %c0_i32_0, %c0_i32_1 : i32, i32, i32
  }
  func.func @transform_3(%arg0: i32) -> (i32, i32, i32) {
    %c0_i32 = arith.constant 0 : i32
    %c0_i32_0 = arith.constant 0 : i32
    %c0_i32_1 = arith.constant 0 : i32
    %c0_i32_2 = arith.constant 0 : i32
    return %c0_i32, %c0_i32_0, %c0_i32_1 : i32, i32, i32
  }
  func.func @transform_4(%arg0: i32) -> (i32, i32, i32) {
    %c0_i32 = arith.constant 0 : i32
    %c0_i32_0 = arith.constant 0 : i32
    %c0_i32_1 = arith.constant 0 : i32
    %c0_i32_2 = arith.constant 0 : i32
    return %c0_i32, %c0_i32_0, %c0_i32_1 : i32, i32, i32
  }
  func.func @transform_5(%arg0: i32) -> (i32, i32, i32) {
    %c0_i32 = arith.constant 0 : i32
    %c0_i32_0 = arith.constant 0 : i32
    %c0_i32_1 = arith.constant 0 : i32
    %c0_i32_2 = arith.constant 0 : i32
    return %c0_i32, %c0_i32_0, %c0_i32_1 : i32, i32, i32
  }
  func.func @transform_6(%arg0: i32) -> (i32, i32, i32) {
    %c0_i32 = arith.constant 0 : i32
    %c0_i32_0 = arith.constant 0 : i32
    %c0_i32_1 = arith.constant 0 : i32
    %c0_i32_2 = arith.constant 0 : i32
    return %c0_i32, %c0_i32_0, %c0_i32_1 : i32, i32, i32
  }
  func.func @transform_7(%arg0: i32) -> (i32, i32) {
    %c0_i32 = arith.constant 0 : i32
    %c0_i32_0 = arith.constant 0 : i32
    %c0_i32_1 = arith.constant 0 : i32
    return %c0_i32, %c0_i32_0 : i32, i32
  }
  func.func @transform_8(%arg0: i32) -> (i32, i32, i32) {
    %c0_i32 = arith.constant 0 : i32
    %c0_i32_0 = arith.constant 0 : i32
    %c0_i32_1 = arith.constant 0 : i32
    return %arg0, %c0_i32, %c0_i32_0 : i32, i32, i32
  }
}

</mosaic_0001>

<bundles_post_ra>
// kernel: embed_texts.1
= control target key start
LH: loop header
LB: loop body
LE: loop exit
PB: predicated region body
PF: predicated region fallthrough
CT: control target
= control target key end

     0   :  { %13 = vsyncpa [#allocation3], 0  ;;  %s4507_s0 = inlined_call_operand.vmem [shape: s32[2,8,1], index: 0, kind: input, shape index: {}]   ;;  %s4508_s1 = inlined_call_operand.vmem [shape: f32[64,32], index: 1, kind: input, shape index: {}]   ;;  %s4509_s2 = inlined_call_operand.vmem [shape: f32[2,32,96], index: 2, kind: input, shape index: {}]   ;;  %s4510_s3 = inlined_call_operand.vmem [shape: f32[2,32,32], index: 3, kind: input, shape index: {}]   ;;  %s4511_s4 = inlined_call_operand.vmem [shape: f32[2,32,64], index: 4, kind: input, shape index: {}]   ;;  %s4512_s5 = inlined_call_operand.vmem [shape: f32[2,64,32], index: 5, kind: input, shape index: {}]   ;;  %s4513_s6 = inlined_call_operand.vmem [shape: f32[2,8,96], index: 6, kind: input, shape index: {}]   ;;  %s4514_s7 = inlined_call_operand.vmem [shape: f32[80,32], index: 7, kind: input, shape index: {}]   ;;  %s4515_s8 = inlined_call_operand.hbm [shape: f32[2,1,16], index: 8, kind: output, shape index: {}]  }
   0x1   :  { %15 = vsyncpa [#allocation3 + $0x1], 0  ;;  %s3916_s27 = smov 0   ;;  %s3918_s28 = smov 0  }
   0x2   :  { %s3920_s29 = smov 0   ;;  %s3922_s30 = smov 0  }
   0x3 LB: > { %s3937_s9 = sadd.s32 4294967295, %s3853_s30   ;;  %s3195_s10 = sadd.s32 4294967294, %s3853_s30   ;;  %s3853_s30 = sphi %s3922_s30, %s4535_s30   ;;  %s3849_s29 = sphi %s3920_s29, %s4534_s29   ;;  %s3845_s28 = sphi %s3918_s28, %s4533_s28   ;;  %s3841_s27 = sphi %s3916_s27, %s4532_s27  }
   0x4   : > { %s3941_s11 = sadd.s32 1, %s3853_s30   ;;  %s201_s12 = sadd.s32 1, %s3849_s29 }
   0x5   : > { %s198_s13 = ssub.s32 %s3853_s30, %s3941_s11  ;;  %p211_p0 = scmp.ne.s32.totalorder %s3849_s29, %s3845_s28 }
   0x6   : > { %p199_p1 = scmp.eq.s32.totalorder %s198_s13, 0  ;;  %p212_p2 = scmp.eq.s32.totalorder %s3937_s9, 1 }
   0x7   : > { %p217_p3 = scmp.ne.s32.totalorder %s3845_s28, %s3841_s27  ;;  %p218_p4 = scmp.eq.s32.totalorder %s3195_s10, 1 }
   0x8   : > { %s3952_s14 = scalar_select %p199_p1, %s3849_s29, %s201_s12  }
   0x9   : > { %p3954_p5 = por %p212_p2, %p211_p0  ;;  %p3958_p6 = por %p218_p4, %p217_p3 }
   0xa   : > { %p3198_p7 = scmp.ge.s32.totalorder %s3853_s30, 1  ;;  %p264_p8 = scmp.lt.s32.totalorder %s3853_s30, 3 }
   0xc   : > { %p265_p9 = pnand %p3198_p7, %p264_p8 }
   0xd   : > { %p296_p10 = scmp.lt.s32.totalorder (!%p265_p9), %s3937_s9, 1  ;;  %v309_v0 = vld [vmem:[%s4508_s1] sm:$0xff] (!%p265_p9)  ;;  %v310_v1 = vld [vmem:[%s4508_s1 + $0x8] sm:$0xff] (!%p265_p9)  ;;  %v311_v2 = vld [vmem:[%s4508_s1 + $0x10] sm:$0xff] (!%p265_p9)  ;;  %v3855_v3 = vmov (!%p265_p9), 0   ;;  %v3856_v4 = vmov (!%p265_p9), 0.0|0.0   ;;  %v300_v16 = vlaneseq (!%p265_p9) }
   0xe   : > { %268 = sbr.rel (%p265_p9) target bundleno = 9276 (0x243c), region = 52  ;;  %3742 = vset.pattern.permute.xlu0 (!%p265_p9), %v3855_v3  ;;  %3616 = vmatprep.subr.bf16.mxu0 (!%p265_p9), %v3856_v4  ;;  %v3617_v5 = vpack.c.bf16 (!%p265_p9), %v310_v1, %v309_v0  ;;  %v312_v6 = vld [vmem:[%s4508_s1 + $0x18] sm:$0xff] (!%p265_p9)  ;;  %v313_v8 = vld [vmem:[%s4508_s1 + $0x20] sm:$0xff] (!%p265_p9)  ;;  %v314_v9 = vld [vmem:[%s4508_s1 + $0x28] sm:$0xff] (!%p265_p9)  ;;  %vm3857_vm0 = vmmov (!%p265_p9), 0   ;;  %v3858_v14 = vmov (!%p265_p9), 0.0  }
   0xf   : > { %3628 = vmatprep.subr.bf16.mxu1 (!%p265_p9), %v3856_v4  ;;  %v3620_v7 = vpack.c.bf16 (!%p265_p9), %v312_v6, %v311_v2  ;;  %v3623_v11 = vpack.c.bf16 (!%p265_p9), %v314_v9, %v313_v8  ;;  %v315_v12 = vld [vmem:[%s4508_s1 + $0x30] sm:$0xff] (!%p265_p9)  ;;  %v316_v13 = vld [vmem:[%s4508_s1 + $0x38] sm:$0xff] (!%p265_p9)  ;;  %3389 = vmatprep.mubr.msk.f32.mxu0 (!%p265_p9), %vm3857_vm0, %v3858_v14  ;;  %v301_v17 = vand.u32 (!%p265_p9), 127, %v300_v16  ;;  %vm318_vm1 = vcmask (!%p265_p9), 523264   ;;  %v317_v20 = vld [vmem:[%s4514_s7] sm:$0xff] (!%p265_p9)  ;;  %s3859_s12 = smov (!%p265_p9), 96  }
  0x10   : > { %3618 = vmatpush3.bf16.msra.mxu0 (!%p265_p9), %v3617_v5  ;;  %3400 = vmatprep.mubr.msk.f32.mxu1 (!%p265_p9), %vm3857_vm0, %v3858_v14  ;;  %v3626_v15 = vpack.c.bf16 (!%p265_p9), %v316_v13, %v315_v12  ;;  %vm394_vm3 = vcmask (!%p265_p9), 261120   ;;  %v420_v30 = vld [vmem:[%s4509_s2] sm:$0xff] (!%p265_p9)  ;;  %v421_v31 = vld [vmem:[%s4509_s2 + $0x8] sm:$0xff] (!%p265_p9)  ;;  %v422_v32 = vld [vmem:[%s4509_s2 + $0x10] sm:$0xff] (!%p265_p9)  ;;  %v4038_v45 = vshrl.u32 (!%p265_p9), %v300_v16, 7  ;;  %vm508_vm4 = vcmask (!%p265_p9), 64512  }
  0x11   : > { %3619 = vmatprep.subr.bf16.mxu0 (!%p265_p9), %v3856_v4  ;;  %v3629_v33 = vpack.c.bf16 (!%p265_p9), %v421_v31, %v420_v30  ;;  %v423_v34 = vld [vmem:[%s4509_s2 + $0x18] sm:$0xff] (!%p265_p9)  ;;  %v3202_v40 = vld [vmem:[%s4514_s7 + $0x8] ss:$0 sm:$0xff] (!%p265_p9)  ;;  %v3203_v42 = vld [vmem:[%s4514_s7 + $0x9] ss:$0 sm:$0xff] (!%p265_p9)  ;;  %s3860_s13 = smov (!%p265_p9), 88  }
  0x12   : > { %v3632_v35 = vpack.c.bf16 (!%p265_p9), %v423_v34, %v422_v32  ;;  %v430_v46 = vsub.s32 (!%p265_p9), 0, %v4038_v45  ;;  %v4044_v47 = vld [vmem:[%s4513_s6] sm:$0xff] (!%p265_p9)  ;;  %s3861_s17 = smov (!%p265_p9), 64   ;;  %s3862_s18 = smov (!%p265_p9), 120   ;;  %vm3125_vm5 = vcmask (!%p265_p9), 122880  }
  0x13   : > { %3630 = vmatpush3.bf16.msra.mxu1 (!%p265_p9), %v3629_v33  ;;  %v424_v2 = vld [vmem:[%s4510_s3] sm:$0xff] (!%p265_p9)  ;;  %s4522_s21 = smov (!%p265_p9), 56   ;;  %s4520_s22 = smov (!%p265_p9), 112  }
  0x14   : > { %3621 = vmatpush3.bf16.msra.mxu0 (!%p265_p9), %v3620_v7  ;;  %3631 = vmatprep.subr.bf16.mxu1 (!%p265_p9), %v3856_v4  ;;  %v431_v48 = vrot.slane (!%p265_p9), %v4044_v47, %v430_v46  ;;  %s4521_s23 = smov (!%p265_p9), 80   ;;  %s4517_s10 = smov (!%p265_p9), 104  }
  0x15   : > { %s297_s25 = scalar_select %p296_p10, %s3937_s9, 1  ;;  %3622 = vmatprep.subr.bf16.mxu0 %v3856_v4 }
  0x16   : > { %s4518_s19 = smov 72   ;;  %s4527_s24 = smov 112  }
  0x17   : > { %s3199_s26 = sshll.u32 %s297_s25, 3  ;;  %3633 = vmatpush3.bf16.msra.mxu1 %v3632_v35  ;;  %s4516_s25 = smov 40  }
  0x18   : > { %s299_s20 = scalar_lea.vmem %s4507_s0, %s3199_s26  ;;  %3624 = vmatpush3.bf16.msra.mxu0 %v3623_v11  ;;  %3403 = vmatprep.subr.mxu1 %v3858_v14  ;;  %s4519_s26 = smov 48  }
  0x19   : > { %v302_v10 = vld [vmem:[%s299_s20] sm:$0xff]  ;;  %3625 = vmatprep.subr.bf16.mxu0 %v3856_v4 }
  0x1a   : > { %304 = vperm.xlu0 %3742, %v302_v10  }
  0x1c   : > { %3627 = vmatpush3.bf16.msra.mxu0 %v3626_v15 }
  0x1d   : > { %3423 = vmatprep.subr.mxu0 %v3858_v14 }
  0x99   : > { %v305_v18 = vpop.permute.xlu0 %304 }
  0x9a   : > { %vm306_vm2 = vcmp.eq.s32.totalorder %v305_v18, %v301_v17 }
  0x9b   : > { %v3200_v19 = vsel %vm306_vm2, 1.0, %v3858_v14 }
  0x9c   : > { %3390 = vmatmul.mubr.msk.f32.vlgmr.msra.gmra.mrb[0].mxu0 %vm318_vm1, %v3200_v19 }
  0x9d   : > { %3425 = vmatprep.mubr.msk.f32.mxu0 %vm3857_vm0, %v3858_v14 }
 0x16f   : > { %v388_v21 = vpop.f32.mrb[0].mxu0 }
 0x170   : > { %v389_v22 = vadd.f32 %v388_v21, %v317_v20  ;;  %v3391_v23 = vpop.f32.mrb[1].mxu0 }
 0x172   : > { %v395_v24 = vsel %vm394_vm3, %v389_v22, 0.0 }
 0x173   : > { %396 = vadd.xlane.f32.xlu0 %v395_v24 }
 0x200   : > { %v397_v25 = vpop.xlane.xlu0 %396 }
 0x201   : > { %v399_v26 = vmul.f32 0.03125, %v397_v25 }
 0x203   : > { %v400_v27 = vsub.f32 %v389_v22, %v399_v26  ;;  %v425_v26 = vld [vmem:[%s4510_s3 + $0x8] sm:$0xff] }
 0x205   : > { %v401_v28 = vmul.f32 %v400_v27, %v400_v27 }
 0x207   : > { %v402_v29 = vsel %vm394_vm3, %v401_v28, 0.0 }
 0x208   : > { %403 = vadd.xlane.f32.xlu1 %v402_v29 }
 0x295   : > { %v404_v36 = vpop.xlane.xlu1 %403 }
 0x296   : > { %v405_v37 = vmul.f32 0.03125, %v404_v36 }
 0x298   : > { %v406_v38 = vadd.f32 1e-12, %v405_v37 }
 0x29a   : > { %3743 = vrsqrt.f32 %v406_v38 }
 0x2a4   : > { %v3744_v39 = vpop.eup %3743 }
 0x2a5   : > { %v408_v41 = vmul.f32 %v3744_v39, %v400_v27  ;;  %v746_v39 = vsub.s32 1, %v4038_v45 }
 0x2a7   : > { %v413_v43 = vmul.f32 %v3202_v40, %v408_v41  ;;  %v747_v40 = vrot.slane %v4044_v47, %v746_v39 }
 0x2a9   : > { %v4032_v44 = vadd.f32 %v3203_v42, %v413_v43 }
 0x2ab   : > { %3401 = vmatmul.mubr.msk.f32.vlgmr.msra.gmra.mrb[0].mxu1 %vm394_vm3, %v4032_v44 }
 0x2ac   : > { %3405 = vmatprep.mubr.msk.f32.mxu1 %vm3857_vm0, %v3858_v14 }
 0x37e   : > { %v501_v49 = vpop.f32.mrb[0].mxu1 }
 0x37f   : > { %v4049_v50 = vadd.f32 %v501_v49, %v431_v48  ;;  %v3402_v51 = vpop.f32.mrb[1].mxu1 }
 0x381   : > { %506 = vrot.lane.b32.xlu1 %v4049_v50, %s3859_s12 }
 0x3f3   : > { %v507_v52 = vpop.permute.xlu1 %506 }
 0x3f4   : > { %3404 = vmatpush3.xpose.msk.msra.mxu1 %vm508_vm4, %v507_v52 }
 0x3f5   : > { %3408 = vmatprep.subr.mxu1 %v3858_v14 }
 0x3f7   : > { %3406 = vmatmul.mubr.msk.f32.vlgmr.msra.gmra.mrb[2].mxu1 %vm508_vm4, %v4049_v50 }
 0x3f8   : > { %3410 = vmatprep.mubr.msk.f32.mxu1 %vm3857_vm0, %v3858_v14 }
 0x4ca   : > { %v579_v53 = vpop.f32.mrb[2].mxu1 }
 0x4cb   : > { %v583_v54 = vmul.f32 0.35355338, %v579_v53  ;;  %v3407_v55 = vpop.f32.mrb[3].mxu1 }
 0x4cc   : > { %v426_v55 = vld [vmem:[%s4510_s3 + $0x10] sm:$0xff] }
 0x4cd   : > { %v584_v56 = vsel %vm508_vm4, %v583_v54, -inf }
 0x4ce   : > { %585 = vmax.xlane.f32.xlu1 %v584_v56 }
 0x4df   : > { %751 = vrot.lane.b32.xlu1 %v4049_v50, %s3860_s13 }
 0x55b   : > { %v586_v57 = vpop.xlane.xlu1 %585 }
 0x55c   : > { %v587_v58 = vsub.f32 %v583_v54, %v586_v57 }
 0x55e   : > { %v588_v59 = vmul.f32 1.442695, %v587_v58 }
 0x55f   : > { %v752_v5 = vpop.permute.xlu1 %751 }
 0x560   : > { %3745 = vpow2.f32 %v588_v59 }
 0x56a   : > { %v3746_v60 = vpop.eup %3745 }
 0x56b   : > { %v590_v61 = vsel %vm508_vm4, %v3746_v60, 0.0 }
 0x56c   : > { %591 = vadd.xlane.f32.xlu0 %v590_v61 }
 0x582   : > { %595 = vrot.lane.b32.xlu0 %v4049_v50, %s3861_s17 }
 0x586   : > { %749 = vrot.lane.b32.xlu0 %v4049_v50, %s3862_s18 }
 0x5f9   : > { %v592_v62 = vpop.xlane.xlu0 %591 }
 0x5fa   : > { %3747 = vrcp.f32 %v592_v62 }
 0x5fd   : > { %v596_v63 = vpop.permute.xlu0 %595 }
 0x5fe   : > { %3409 = vmatpush3.msra.mxu1 %v596_v63 }
 0x5ff   : > { %3413 = vmatprep.subr.mxu1 %v3858_v14 }
 0x601   : > { %v750_v7 = vpop.permute.xlu0 %749 }
 0x604   : > { %v3748_v0 = vpop.eup %3747 }
 0x605   : > { %v594_v1 = vmul.f32 %v3748_v0, %v3746_v60 }
 0x607   : > { %3411 = vmatmul.mubr.msk.f32.vlgmr.msra.gmra.mrb[4].mxu1 %vm508_vm4, %v594_v1 }
 0x608   : > { %3414 = vmatpush3.msra.mxu1 %v424_v2  ;;  %3415 = vmatprep.mubr.msk.f32.mxu1 %vm3857_vm0, %v3858_v14 }
 0x609   : > { %3418 = vmatprep.subr.mxu1 %v3858_v14 }
 0x6da   : > { %v667_v3 = vpop.f32.mrb[4].mxu1 }
 0x6db   : > { %v3412_v6 = vpop.f32.mrb[5].mxu1  ;;  %3416 = vmatmul.mubr.msk.f32.vlgmr.msra.gmra.mrb[6].mxu1 %vm508_vm4, %v667_v3 }
 0x6dc   : > { %3419 = vmatpush3.xpose.msk.msra.mxu1 %vm508_vm4, %v752_v5  ;;  %3420 = vmatprep.mubr.msk.f32.mxu1 %vm3857_vm0, %v3858_v14  ;;  %v427_v5 = vld [vmem:[%s4510_s3 + $0x18] sm:$0xff] }
 0x6dd   : > { %3428 = vmatprep.subr.mxu1 %v3858_v14 }
 0x6df   : > { %3421 = vmatmul.mubr.msk.f32.vlgmr.msra.gmra.mrb[8].mxu1 %vm508_vm4, %v750_v7 }
 0x6e0   : > { %3430 = vmatprep.mubr.msk.f32.mxu1 %vm3857_vm0, %v3858_v14  ;;  %3429 = vmatpush3.msra.mxu1 %v425_v26 }
 0x6e1   : > { %3438 = vmatprep.subr.mxu1 %v3858_v14 }
 0x7ae   : > { %v4083_v8 = vpop.f32.mrb[6].mxu1 }
 0x7af   : > { %v3417_v9 = vpop.f32.mrb[7].mxu1  ;;  %v748_v41 = vadd.f32 %v747_v40, %v4083_v8 }
 0x7b2   : > { %v823_v10 = vpop.f32.mrb[8].mxu1 }
 0x7b3   : > { %v827_v11 = vmul.f32 0.35355338, %v823_v10  ;;  %v3422_v12 = vpop.f32.mrb[9].mxu1 }
 0x7b5   : > { %v828_v13 = vsel %vm508_vm4, %v827_v11, -inf }
 0x7b6   : > { %829 = vmax.xlane.f32.xlu0 %v828_v13 }
 0x7cc   : > { %839 = vrot.lane.b32.xlu0 %v4049_v50, %s4522_s21  ;;  %s4531_s21 = smov 40  }
 0x7d0   : > { %989 = vrot.lane.b32.xlu0 %v4049_v50, %s4520_s22  ;;  %s294_s22 = sand.u32 1, %s3845_s28  }
 0x843   : > { %v830_v15 = vpop.xlane.xlu0 %829 }
 0x844   : > { %v831_v16 = vsub.f32 %v827_v11, %v830_v15 }
 0x846   : > { %v832_v17 = vmul.f32 1.442695, %v831_v16 }
 0x847   : > { %v840_v18 = vpop.permute.xlu0 %839 }
 0x848   : > { %3749 = vpow2.f32 %v832_v17  ;;  %3424 = vmatpush3.msra.mxu0 %v840_v18 }
 0x849   : > { %3433 = vmatprep.subr.mxu0 %v3858_v14 }
 0x84b   : > { %v990_v25 = vpop.permute.xlu0 %989 }
 0x852   : > { %v3750_v19 = vpop.eup %3749 }
 0x853   : > { %v834_v20 = vsel %vm508_vm4, %v3750_v19, 0.0 }
 0x854   : > { %835 = vadd.xlane.f32.xlu1 %v834_v20 }
 0x865   : > { %991 = vrot.lane.b32.xlu1 %v4049_v50, %s4521_s23  ;;  %s3265_s23 = sshll.u32 %s3937_s9, 4  ;;  %s3870_s9 = smov [#allocation2]  }
 0x866   : > { %s4465_s20 = scalar_lea.hbm %s4515_s8, %s3265_s23 }
 0x8e1   : > { %v836_v21 = vpop.xlane.xlu1 %835 }
 0x8e2   : > { %3751 = vrcp.f32 %v836_v21 }
 0x8e5   : > { %v992_v24 = vpop.permute.xlu1 %991 }
 0x8ec   : > { %v3752_v22 = vpop.eup %3751 }
 0x8ed   : > { %v838_v23 = vmul.f32 %v3752_v22, %v3750_v19 }
 0x8ef   : > { %3426 = vmatmul.mubr.msk.f32.vlgmr.msra.gmra.mrb[2].mxu0 %vm508_vm4, %v838_v23 }
 0x8f0   : > { %3434 = vmatpush3.xpose.msk.msra.mxu0 %vm508_vm4, %v992_v24  ;;  %3435 = vmatprep.mubr.msk.f32.mxu0 %vm3857_vm0, %v3858_v14  ;;  %v1493_v24 = vld [vmem:[%s4511_s4] sm:$0xff] }
 0x8f1   : > { %3443 = vmatprep.subr.mxu0 %v3858_v14 }
 0x8f3   : > { %3436 = vmatmul.mubr.msk.f32.vlgmr.msra.gmra.mrb[4].mxu0 %vm508_vm4, %v990_v25  ;;  %v1494_v25 = vld [vmem:[%s4511_s4 + $0x8] sm:$0xff] }
 0x8f4   : > { %3445 = vmatprep.mubr.msk.f32.mxu0 %vm3857_vm0, %v3858_v14  ;;  %3444 = vmatpush3.msra.mxu0 %v426_v55  ;;  %v3635_v26 = vpack.c.bf16 %v1494_v25, %v1493_v24  ;;  %v1589_v55 = vld [vmem:[%s4512_s5 + $0x30] sm:$0xff]  ;;  %v3227_v25 = vld [vmem:[%s4509_s2 + $0x38] sm:$0xff] }
 0x8f5   : > { %3453 = vmatprep.subr.mxu0 %v3858_v14  ;;  %v3226_v24 = vld [vmem:[%s4509_s2 + $0x30] sm:$0xff] }
 0x9c2   : > { %v911_v27 = vpop.f32.mrb[2].mxu0 }
 0x9c3   : > { %v3427_v28 = vpop.f32.mrb[3].mxu0  ;;  %3431 = vmatmul.mubr.msk.f32.vlgmr.msra.gmra.mrb[10].mxu1 %vm508_vm4, %v911_v27  ;;  %v1496_v27 = vld [vmem:[%s4511_s4 + $0x18] sm:$0xff] }
 0x9c4   : > { %3440 = vmatprep.mubr.msk.f32.mxu1 %vm3857_vm0, %v3858_v14 }
 0x9c6   : > { %v1063_v29 = vpop.f32.mrb[4].mxu0 }
 0x9c7   : > { %v1067_v30 = vmul.f32 0.35355338, %v1063_v29  ;;  %v3437_v31 = vpop.f32.mrb[5].mxu0 }
 0x9c9   : > { %v1068_v32 = vsel %vm508_vm4, %v1067_v30, -inf }
 0x9ca   : > { %1069 = vmax.xlane.f32.xlu0 %v1068_v32  ;;  %v1485_v32 = vsub.s32 2, %v4038_v45 }
 0x9e0   : > { %1079 = vrot.lane.b32.xlu0 %v4049_v50, %s4519_s26  ;;  %s4528_s26 = smov 48  }
 0x9e4   : > { %1229 = vrot.lane.b32.xlu0 %v4049_v50, %s4517_s10  ;;  %s4529_s10 = smov 72  }
 0xa57   : > { %v1070_v33 = vpop.xlane.xlu0 %1069 }
 0xa58   : > { %v1071_v34 = vsub.f32 %v1067_v30, %v1070_v33  ;;  %v1490_v33 = vsub.s32 3, %v4038_v45 }
 0xa5a   : > { %v1072_v35 = vmul.f32 1.442695, %v1071_v34  ;;  %v1486_v34 = vrot.slane %v4044_v47, %v1485_v32 }
 0xa5b   : > { %v1080_v36 = vpop.permute.xlu0 %1079 }
 0xa5c   : > { %3753 = vpow2.f32 %v1072_v35  ;;  %3439 = vmatpush3.msra.mxu1 %v1080_v36 }
 0xa5d   : > { %3448 = vmatprep.subr.mxu1 %v3858_v14 }
 0xa5f   : > { %v1230_v54 = vpop.permute.xlu0 %1229 }
 0xa66   : > { %v3754_v37 = vpop.eup %3753 }
 0xa67   : > { %v1074_v38 = vsel %vm508_vm4, %v3754_v37, 0.0 }
 0xa68   : > { %1075 = vadd.xlane.f32.xlu1 %v1074_v38 }
 0xa79   : > { %1231 = vrot.lane.b32.xlu1 %v4049_v50, %s4518_s19  ;;  %s4530_s19 = smov 104  }
 0xa96   : > { %v984_v42 = vpop.f32.mrb[10].mxu1 }
 0xa97   : > { %v988_v43 = vadd.f32 %v984_v42, %v748_v41  ;;  %v3432_v48 = vpop.f32.mrb[11].mxu1  ;;  %v1583_v41 = vld [vmem:[%s4512_s5] sm:$0xff]  ;;  %v1584_v42 = vld [vmem:[%s4512_s5 + $0x8] sm:$0xff] }
 0xa98   : > { %v1585_v48 = vld [vmem:[%s4512_s5 + $0x10] sm:$0xff] }
 0xaf5   : > { %v1076_v49 = vpop.xlane.xlu1 %1075 }
 0xaf6   : > { %3755 = vrcp.f32 %v1076_v49  ;;  %v1586_v49 = vld [vmem:[%s4512_s5 + $0x18] sm:$0xff] }
 0xaf9   : > { %v1232_v53 = vpop.permute.xlu1 %1231 }
 0xb00   : > { %v3756_v51 = vpop.eup %3755 }
 0xb01   : > { %v1078_v52 = vmul.f32 %v3756_v51, %v3754_v37  ;;  %v1491_v37 = vrot.slane %v4044_v47, %v1490_v33  ;;  %v3644_v51 = vpack.c.bf16 %v1586_v49, %v1585_v48 }
 0xb03   : > { %3441 = vmatmul.mubr.msk.f32.vlgmr.msra.gmra.mrb[12].mxu1 %vm508_vm4, %v1078_v52  ;;  %v1587_v52 = vld [vmem:[%s4512_s5 + $0x20] sm:$0xff] }
 0xb04   : > { %3449 = vmatpush3.xpose.msk.msra.mxu1 %vm508_vm4, %v1232_v53  ;;  %3450 = vmatprep.mubr.msk.f32.mxu1 %vm3857_vm0, %v3858_v14  ;;  %v1588_v53 = vld [vmem:[%s4512_s5 + $0x28] sm:$0xff] }
 0xb05   : > { %3458 = vmatprep.subr.mxu1 %v3858_v14 }
 0xb07   : > { %3451 = vmatmul.mubr.msk.f32.vlgmr.msra.gmra.mrb[14].mxu1 %vm508_vm4, %v1230_v54  ;;  %v3647_v54 = vpack.c.bf16 %v1588_v53, %v1587_v52 }
 0xb08   : > { %3460 = vmatprep.mubr.msk.f32.mxu1 %vm3857_vm0, %v3858_v14  ;;  %3459 = vmatpush3.msra.mxu1 %v427_v5 }
 0xb09   : > { %3640 = vmatprep.subr.bf16.mxu1 %v3856_v4 }
 0xbd6   : > { %v1151_v56 = vpop.f32.mrb[12].mxu1 }
 0xbd7   : > { %v3442_v57 = vpop.f32.mrb[13].mxu1  ;;  %3446 = vmatmul.mubr.msk.f32.vlgmr.msra.gmra.mrb[6].mxu0 %vm508_vm4, %v1151_v56  ;;  %v1590_v56 = vld [vmem:[%s4512_s5 + $0x38] sm:$0xff] }
 0xbd8   : > { %3455 = vmatprep.mubr.msk.f32.mxu0 %vm3857_vm0, %v3858_v14  ;;  %v3650_v57 = vpack.c.bf16 %v1590_v56, %v1589_v55 }
 0xbda   : > { %v1303_v58 = vpop.f32.mrb[14].mxu1 }
 0xbdb   : > { %v1307_v59 = vmul.f32 0.35355338, %v1303_v58  ;;  %v3452_v60 = vpop.f32.mrb[15].mxu1  ;;  %v1499_v58 = vsub.s32 4, %v4038_v45 }
 0xbdd   : > { %v1308_v61 = vsel %vm508_vm4, %v1307_v59, -inf }
 0xbde   : > { %1309 = vmax.xlane.f32.xlu0 %v1308_v61 }
 0xbf4   : > { %1319 = vrot.lane.b32.xlu0 %v4049_v50, %s4516_s25 }
 0xc6b   : > { %v1310_v62 = vpop.xlane.xlu0 %1309 }
 0xc6c   : > { %v1311_v63 = vsub.f32 %v1307_v59, %v1310_v62  ;;  %v1500_v59 = vrot.slane %v4044_v47, %v1499_v58 }
 0xc6e   : > { %v1312_v0 = vmul.f32 1.442695, %v1311_v63 }
 0xc6f   : > { %v1320_v1 = vpop.permute.xlu0 %1319 }
 0xc70   : > { %3757 = vpow2.f32 %v1312_v0  ;;  %3454 = vmatpush3.msra.mxu0 %v1320_v1 }
 0xc71   : > { %3634 = vmatprep.subr.bf16.mxu0 %v3856_v4 }
 0xc7a   : > { %v3758_v2 = vpop.eup %3757 }
 0xc7b   : > { %v1314_v3 = vsel %vm508_vm4, %v3758_v2, 0.0 }
 0xc7c   : > { %1315 = vadd.xlane.f32.xlu1 %v1314_v3 }
 0xcaa   : > { %v1224_v50 = vpop.f32.mrb[6].mxu0 }
 0xcab   : > { %v1228_v6 = vadd.f32 %v1224_v50, %v988_v43  ;;  %v3447_v7 = vpop.f32.mrb[7].mxu0  ;;  %v3641_v43 = vpack.c.bf16 %v1584_v42, %v1583_v41 }
 0xd09   : > { %v1316_v8 = vpop.xlane.xlu1 %1315 }
 0xd0a   : > { %3759 = vrcp.f32 %v1316_v8  ;;  %v1593_v8 = vsub.s32 5, %v4038_v45 }
 0xd14   : > { %v3760_v9 = vpop.eup %3759 }
 0xd15   : > { %v1318_v10 = vmul.f32 %v3760_v9, %v3758_v2  ;;  %v1594_v9 = vrot.slane %v4044_v47, %v1593_v8 }
 0xd17   : > { %3456 = vmatmul.mubr.msk.f32.vlgmr.msra.gmra.mrb[8].mxu0 %vm508_vm4, %v1318_v10 }
 0xd18   : > { %3471 = vmatprep.mubr.msk.f32.mxu0 %vm3857_vm0, %v3858_v14  ;;  %3636 = vmatpush3.bf16.msra.mxu0 %v3635_v26  ;;  %v3656_v26 = vpack.c.bf16 %v3227_v25, %v3226_v24 }
 0xd19   : > { %3637 = vmatprep.subr.bf16.mxu0 %v3856_v4 }
 0xdea   : > { %v1391_v11 = vpop.f32.mrb[8].mxu0 }
 0xdeb   : > { %v3457_v12 = vpop.f32.mrb[9].mxu0  ;;  %3461 = vmatmul.mubr.msk.f32.vlgmr.msra.gmra.mrb[16].mxu1 %vm508_vm4, %v1391_v11 }
 0xdec   : > { %3490 = vmatprep.mubr.msk.f32.mxu1 %vm3857_vm0, %v3858_v14  ;;  %3642 = vmatpush3.bf16.msra.mxu1 %v3641_v43 }
 0xded   : > { %3643 = vmatprep.subr.bf16.mxu1 %v3856_v4 }
 0xdf0   : > { %3645 = vmatpush3.bf16.msra.mxu1 %v3644_v51 }
 0xdf1   : > { %3646 = vmatprep.subr.bf16.mxu1 %v3856_v4 }
 0xdf4   : > { %3648 = vmatpush3.bf16.msra.mxu1 %v3647_v54 }
 0xdf5   : > { %3649 = vmatprep.subr.bf16.mxu1 %v3856_v4 }
 0xdf8   : > { %3651 = vmatpush3.bf16.msra.mxu1 %v3650_v57 }
 0xdf9   : > { %3509 = vmatprep.subr.mxu1 %v3858_v14 }
 0xebe   : > { %v1464_v13 = vpop.f32.mrb[16].mxu1 }
 0xebf   : > { %v1468_v15 = vadd.f32 %v1464_v13, %v1228_v6  ;;  %v3462_v16 = vpop.f32.mrb[17].mxu1 }
 0xec1   : > { %v1469_v17 = vadd.f32 %v1468_v15, %v4032_v44  ;;  %v1495_v44 = vld [vmem:[%s4511_s4 + $0x10] sm:$0xff] }
 0xec2   : > { %v3638_v28 = vpack.c.bf16 %v1496_v27, %v1495_v44 }
 0xec3   : > { %v1470_v18 = vsel %vm394_vm3, %v1469_v17, 0.0 }
 0xec4   : > { %1471 = vadd.xlane.f32.xlu1 %v1470_v18  ;;  %3639 = vmatpush3.bf16.msra.mxu0 %v3638_v28 }
 0xec5   : > { %3652 = vmatprep.subr.bf16.mxu0 %v3856_v4 }
 0xf51   : > { %v1472_v19 = vpop.xlane.xlu1 %1471 }
 0xf52   : > { %v1473_v20 = vmul.f32 0.03125, %v1472_v19 }
 0xf54   : > { %v1474_v21 = vsub.f32 %v1469_v17, %v1473_v20 }
 0xf56   : > { %v1475_v22 = vmul.f32 %v1474_v21, %v1474_v21 }
 0xf58   : > { %v1476_v23 = vsel %vm394_vm3, %v1475_v22, 0.0  ;;  %v3225_v22 = vld [vmem:[%s4509_s2 + $0x28] sm:$0xff] }
 0xf59   : > { %1477 = vadd.xlane.f32.xlu1 %v1476_v23 }
 0xfe6   : > { %v1478_v29 = vpop.xlane.xlu1 %1477 }
 0xfe7   : > { %v1479_v30 = vmul.f32 0.03125, %v1478_v29  ;;  %v1684_v29 = vsub.s32 6, %v4038_v45 }
 0xfe9   : > { %v1480_v31 = vadd.f32 1e-12, %v1479_v30  ;;  %v1689_v30 = vsub.s32 7, %v4038_v45  ;;  %v3050_v45 = vld [vmem:[%s4514_s7 + $0x40] sm:$0xff] }
 0xfeb   : > { %3761 = vrsqrt.f32 %v1480_v31  ;;  %v1685_v31 = vrot.slane %v4044_v47, %v1684_v29 }
 0xff5   : > { %v3762_v35 = vpop.eup %3761 }
 0xff6   : > { %v1482_v36 = vmul.f32 %v3762_v35, %v1474_v21  ;;  %v3224_v21 = vld [vmem:[%s4509_s2 + $0x20] sm:$0xff] }
 0xff7   : > { %v3653_v23 = vpack.c.bf16 %v3225_v22, %v3224_v21 }
 0xff8   : > { %v1487_v38 = vmul.f32 %v1486_v34, %v1482_v36  ;;  %v1690_v36 = vrot.slane %v4044_v47, %v1689_v30 }
 0xffa   : > { %v1492_v40 = vadd.f32 %v1491_v37, %v1487_v38 }
 0xffc   : > { %3472 = vmatmul.mubr.msk.f32.vlgmr.msra.gmra.mrb[10].mxu0 %vm394_vm3, %v1492_v40 }
 0xffd   : > { %3501 = vmatprep.mubr.msk.f32.mxu0 %vm3857_vm0, %v3858_v14  ;;  %3654 = vmatpush3.bf16.msra.mxu0 %v3653_v23  ;;  %v3229_v23 = vld [vmem:[%s4510_s3 + $0x28] sm:$0xff] }
 0xffe   : > { %3655 = vmatprep.subr.bf16.mxu0 %v3856_v4 }
0x1001   : > { %3657 = vmatpush3.bf16.msra.mxu0 %v3656_v26 }
0x1002   : > { %3504 = vmatprep.subr.mxu0 %v3858_v14 }
0x10cf   : > { %v1570_v60 = vpop.f32.mrb[10].mxu0 }
0x10d0   : > { %v1571_v61 = vadd.f32 %v1570_v60, %v1500_v59  ;;  %v3473_v62 = vpop.f32.mrb[11].mxu0  ;;  %v3228_v60 = vld [vmem:[%s4510_s3 + $0x20] sm:$0xff] }
0x10d2   : > { %v1575_v63 = vmul.f32 0.044715, %v1571_v61  ;;  %v1574_v50 = vmul.f32 0.5, %v1571_v61 }
0x10d4   : > { %v1576_v0 = vmul.f32 %v1575_v63, %v1571_v61 }
0x10d6   : > { %v1577_v1 = vmul.f32 %v1576_v0, %v1571_v61 }
0x10d8   : > { %v1578_v2 = vadd.f32 %v1577_v1, %v1571_v61 }
0x10da   : > { %v1579_v3 = vmul.f32 0.7978846, %v1578_v2 }
0x10dc   : > { %3763 = vtanh.f32 %v1579_v3 }
0x10e6   : > { %v3764_v5 = vpop.eup %3763 }
0x10e7   : > { %v1581_v6 = vadd.f32 1.0, %v3764_v5 }
0x10e9   : > { %v1582_v7 = vmul.f32 %v1581_v6, %v1574_v50 }
0x10eb   : > { %3491 = vmatmul.mubr.msk.f32.vlgmr.msra.gmra.mrb[18].mxu1 %vm318_vm1, %v1582_v7 }
0x10ec   : > { %3511 = vmatprep.mubr.msk.f32.mxu1 %vm3857_vm0, %v3858_v14 }
0x11be   : > { %v1664_v10 = vpop.f32.mrb[18].mxu1 }
0x11bf   : > { %v1665_v11 = vadd.f32 %v1664_v10, %v1594_v9  ;;  %v3492_v12 = vpop.f32.mrb[19].mxu1 }
0x11c1   : > { %v1668_v13 = vadd.f32 %v1665_v11, %v1492_v40  ;;  %v4253_v40 = vld [vmem:[%s4513_s6 + $0x8] sm:$0xff] }
0x11c2   : > { %v1707_v41 = vrot.slane %v4253_v40, %v430_v46 }
0x11c3   : > { %v1669_v15 = vsel %vm394_vm3, %v1668_v13, 0.0 }
0x11c4   : > { %1670 = vadd.xlane.f32.xlu1 %v1669_v15 }
0x1251   : > { %v1671_v16 = vpop.xlane.xlu1 %1670 }
0x1252   : > { %v1672_v17 = vmul.f32 0.03125, %v1671_v16 }
0x1254   : > { %v1673_v18 = vsub.f32 %v1668_v13, %v1672_v17 }
0x1256   : > { %v1674_v19 = vmul.f32 %v1673_v18, %v1673_v18 }
0x1258   : > { %v1675_v20 = vsel %vm394_vm3, %v1674_v19, 0.0 }
0x1259   : > { %1676 = vadd.xlane.f32.xlu1 %v1675_v20 }
0x12e6   : > { %v1677_v44 = vpop.xlane.xlu1 %1676 }
0x12e7   : > { %v1678_v27 = vmul.f32 0.03125, %v1677_v44 }
0x12e9   : > { %v1679_v28 = vadd.f32 1e-12, %v1678_v27 }
0x12eb   : > { %3765 = vrsqrt.f32 %v1679_v28 }
0x12f5   : > { %v3766_v34 = vpop.eup %3765 }
0x12f6   : > { %v1681_v35 = vmul.f32 %v3766_v34, %v1673_v18 }
0x12f8   : > { %v1686_v37 = vmul.f32 %v1685_v31, %v1681_v35 }
0x12fa   : > { %v4244_v38 = vadd.f32 %v1690_v36, %v1686_v37 }
0x12fc   : > { %3502 = vmatmul.mubr.msk.f32.vlgmr.msra.gmra.mrb[12].mxu0 %vm394_vm3, %v4244_v38 }
0x12fd   : > { %3506 = vmatprep.mubr.msk.f32.mxu0 %vm3857_vm0, %v3858_v14 }
0x13cf   : > { %v1777_v42 = vpop.f32.mrb[12].mxu0 }
0x13d0   : > { %v4258_v47 = vadd.f32 %v1777_v42, %v1707_v41  ;;  %v3503_v43 = vpop.f32.mrb[13].mxu0  ;;  %v2022_v42 = vrot.slane %v4253_v40, %v746_v39  ;;  %v3230_v39 = vld [vmem:[%s4510_s3 + $0x30] sm:$0xff] }
0x13d2   : > { %1782 = vrot.lane.b32.xlu0 %v4258_v47, %s3859_s12  ;;  %s4525_s12 = smov 56  }
0x1444   : > { %v1783_v48 = vpop.permute.xlu0 %1782 }
0x1445   : > { %3505 = vmatpush3.xpose.msk.msra.mxu0 %vm508_vm4, %v1783_v48 }
0x1446   : > { %3514 = vmatprep.subr.mxu0 %v3858_v14 }
0x1448   : > { %3507 = vmatmul.mubr.msk.f32.vlgmr.msra.gmra.mrb[14].mxu0 %vm508_vm4, %v4258_v47 }
0x1449   : > { %3516 = vmatprep.mubr.msk.f32.mxu0 %vm3857_vm0, %v3858_v14  ;;  %3515 = vmatpush3.msra.mxu0 %v3228_v60 }
0x144a   : > { %3524 = vmatprep.subr.mxu0 %v3858_v14 }
0x151b   : > { %v1854_v49 = vpop.f32.mrb[14].mxu0 }
0x151c   : > { %v1858_v46 = vmul.f32 0.35355338, %v1854_v49  ;;  %v3508_v51 = vpop.f32.mrb[15].mxu0 }
0x151e   : > { %v1859_v52 = vsel %vm508_vm4, %v1858_v46, -inf }
0x151f   : > { %1860 = vmax.xlane.f32.xlu1 %v1859_v52 }
0x1530   : > { %1870 = vrot.lane.b32.xlu1 %v4258_v47, %s3861_s17  ;;  %s4526_s17 = smov 80  }
0x1534   : > { %2026 = vrot.lane.b32.xlu1 %v4258_v47, %s3860_s13 }
0x1538   : > { %2024 = vrot.lane.b32.xlu1 %v4258_v47, %s3862_s18 }
0x15ac   : > { %v1861_v53 = vpop.xlane.xlu1 %1860 }
0x15ad   : > { %v1862_v54 = vsub.f32 %v1858_v46, %v1861_v53 }
0x15af   : > { %v1863_v55 = vmul.f32 1.442695, %v1862_v54 }
0x15b0   : > { %v1871_v56 = vpop.permute.xlu1 %1870 }
0x15b1   : > { %3767 = vpow2.f32 %v1863_v55  ;;  %3510 = vmatpush3.msra.mxu1 %v1871_v56 }
0x15b2   : > { %3519 = vmatprep.subr.mxu1 %v3858_v14 }
0x15b4   : > { %v2027_v63 = vpop.permute.xlu1 %2026 }
0x15b8   : > { %v2025_v1 = vpop.permute.xlu1 %2024 }
0x15bb   : > { %v3768_v57 = vpop.eup %3767 }
0x15bc   : > { %v1865_v59 = vsel %vm508_vm4, %v3768_v57, 0.0 }
0x15bd   : > { %1866 = vadd.xlane.f32.xlu0 %v1865_v59 }
0x15d3   : > { %2114 = vrot.lane.b32.xlu0 %v4258_v47, %s4525_s12 }
0x15d7   : > { %2266 = vrot.lane.b32.xlu0 %v4258_v47, %s4526_s17  ;;  %s3795_s17 = sshll.u32 %s3870_s9, 4  ;;  %s3796_s17 = int_to_ptr.vmem [resolvable:$false] %s3795_s17 }
0x15d8   : > { %s3797_s13 = scalar_lea.vmem %s3796_s17, 32 }
0x164a   : > { %v1867_v61 = vpop.xlane.xlu0 %1866 }
0x164b   : > { %3769 = vrcp.f32 %v1867_v61 }
0x164e   : > { %v2115_v3 = vpop.permute.xlu0 %2114 }
0x1652   : > { %v2267_v18 = vpop.permute.xlu0 %2266 }
0x1655   : > { %v3770_v62 = vpop.eup %3769 }
0x1656   : > { %v1869_v0 = vmul.f32 %v3770_v62, %v3768_v57 }
0x1658   : > { %3512 = vmatmul.mubr.msk.f32.vlgmr.msra.gmra.mrb[20].mxu1 %vm508_vm4, %v1869_v0 }
0x1659   : > { %3520 = vmatpush3.xpose.msk.msra.mxu1 %vm508_vm4, %v2027_v63  ;;  %3521 = vmatprep.mubr.msk.f32.mxu1 %vm3857_vm0, %v3858_v14 }
0x165a   : > { %3529 = vmatprep.subr.mxu1 %v3858_v14 }
0x165c   : > { %3522 = vmatmul.mubr.msk.f32.vlgmr.msra.gmra.mrb[22].mxu1 %vm508_vm4, %v2025_v1 }
0x165d   : > { %3531 = vmatprep.mubr.msk.f32.mxu1 %vm3857_vm0, %v3858_v14  ;;  %3530 = vmatpush3.msra.mxu1 %v3229_v23 }
0x165e   : > { %3539 = vmatprep.subr.mxu1 %v3858_v14 }
0x172b   : > { %v1942_v2 = vpop.f32.mrb[20].mxu1 }
0x172c   : > { %v3513_v5 = vpop.f32.mrb[21].mxu1  ;;  %3517 = vmatmul.mubr.msk.f32.vlgmr.msra.gmra.mrb[16].mxu0 %vm508_vm4, %v1942_v2 }
0x172d   : > { %3525 = vmatpush3.msra.mxu0 %v2115_v3  ;;  %3526 = vmatprep.mubr.msk.f32.mxu0 %vm3857_vm0, %v3858_v14  ;;  %v3231_v5 = vld [vmem:[%s4510_s3 + $0x38] sm:$0xff] }
0x172e   : > { %3534 = vmatprep.subr.mxu0 %v3858_v14 }
0x172f   : > { %v2098_v50 = vpop.f32.mrb[22].mxu1 }
0x1730   : > { %v2102_v6 = vmul.f32 0.35355338, %v2098_v50  ;;  %v3523_v7 = vpop.f32.mrb[23].mxu1 }
0x1732   : > { %v2103_v9 = vsel %vm508_vm4, %v2102_v6, -inf }
0x1733   : > { %2104 = vmax.xlane.f32.xlu1 %v2103_v9 }
0x17c0   : > { %v2105_v10 = vpop.xlane.xlu1 %2104 }
0x17c1   : > { %v2106_v11 = vsub.f32 %v2102_v6, %v2105_v10 }
0x17c3   : > { %v2107_v12 = vmul.f32 1.442695, %v2106_v11 }
0x17c5   : > { %3771 = vpow2.f32 %v2107_v12 }
0x17cf   : > { %v3772_v13 = vpop.eup %3771 }
0x17d0   : > { %v2109_v15 = vsel %vm508_vm4, %v3772_v13, 0.0 }
0x17d1   : > { %2110 = vadd.xlane.f32.xlu0 %v2109_v15 }
0x17e7   : > { %2264 = vrot.lane.b32.xlu0 %v4258_v47, %s4527_s24 }
0x17ff   : > { %v2015_v16 = vpop.f32.mrb[16].mxu0 }
0x1800   : > { %v3518_v17 = vpop.f32.mrb[17].mxu0  ;;  %v2023_v43 = vadd.f32 %v2022_v42, %v2015_v16  ;;  %v2766_v42 = vrot.slane %v4253_v40, %v1490_v33  ;;  %v3256_v33 = vld [vmem:[%s4512_s5 + $0x50] sm:$0xff] }
0x185e   : > { %v2111_v19 = vpop.xlane.xlu0 %2110 }
0x185f   : > { %3773 = vrcp.f32 %v2111_v19 }
0x1862   : > { %v2265_v22 = vpop.permute.xlu0 %2264 }
0x1869   : > { %v3774_v20 = vpop.eup %3773 }
0x186a   : > { %v2113_v21 = vmul.f32 %v3774_v20, %v3772_v13 }
0x186c   : > { %3527 = vmatmul.mubr.msk.f32.vlgmr.msra.gmra.mrb[18].mxu0 %vm508_vm4, %v2113_v21 }
0x186d   : > { %3535 = vmatpush3.xpose.msk.msra.mxu0 %vm508_vm4, %v2267_v18  ;;  %3536 = vmatprep.mubr.msk.f32.mxu0 %vm3857_vm0, %v3858_v14 }
0x186e   : > { %3544 = vmatprep.subr.mxu0 %v3858_v14 }
0x1870   : > { %3537 = vmatmul.mubr.msk.f32.vlgmr.msra.gmra.mrb[20].mxu0 %vm508_vm4, %v2265_v22 }
0x1871   : > { %3546 = vmatprep.mubr.msk.f32.mxu0 %vm3857_vm0, %v3858_v14  ;;  %3545 = vmatpush3.msra.mxu0 %v3230_v39  ;;  %v3260_v39 = vld [vmem:[%s4512_s5 + $0x70] sm:$0xff] }
0x1872   : > { %3554 = vmatprep.subr.mxu0 %v3858_v14 }
0x193f   : > { %v2186_v24 = vpop.f32.mrb[18].mxu0 }
0x1940   : > { %v3528_v25 = vpop.f32.mrb[19].mxu0  ;;  %3532 = vmatmul.mubr.msk.f32.vlgmr.msra.gmra.mrb[24].mxu1 %vm508_vm4, %v2186_v24 }
0x1941   : > { %3541 = vmatprep.mubr.msk.f32.mxu1 %vm3857_vm0, %v3858_v14  ;;  %v3249_v25 = vld [vmem:[%s4511_s4 + $0x20] sm:$0xff] }
0x1943   : > { %v2338_v26 = vpop.f32.mrb[20].mxu0 }
0x1944   : > { %v2342_v44 = vmul.f32 0.35355338, %v2338_v26  ;;  %v3538_v27 = vpop.f32.mrb[21].mxu0  ;;  %v3250_v26 = vld [vmem:[%s4511_s4 + $0x28] sm:$0xff] }
0x1945   : > { %v3252_v27 = vld [vmem:[%s4511_s4 + $0x38] sm:$0xff] }
0x1946   : > { %v2343_v28 = vsel %vm508_vm4, %v2342_v44, -inf }
0x1947   : > { %2344 = vmax.xlane.f32.xlu1 %v2343_v28 }
0x1958   : > { %2354 = vrot.lane.b32.xlu1 %v4258_v47, %s4528_s26  ;;  %s295_s26 = scalar_lea.vmem [#allocation2], %s294_s22 }
0x195c   : > { %2506 = vrot.lane.b32.xlu1 %v4258_v47, %s4529_s10  ;;  %s3140_s10 = sshll.u32 %s295_s26, 4  ;;  %s4467_s10 = int_to_ptr.vmem [resolvable:$true] %s3140_s10 }
0x195d   : > { %s3791_s12 = scalar_lea.vmem %s4467_s10, 16  ;;  %p3798_p0 = scmp.lt.s32.totalorder %s4467_s10, %s3796_s17 }
0x195e   : > { %p3792_p11 = scmp.ne.s32.totalorder %s4467_s10, %s3791_s12  ;;  %p3799_p1 = scmp.lt.s32.totalorder %s3797_s13, %s3791_s12 }
0x1960   : > { %2504 = vrot.lane.b32.xlu1 %v4258_v47, %s4530_s19  ;;  %p3793_p12 = pnand %p3792_p11, %p3954_p5  ;;  %p3800_p2 = por %p3799_p1, %p3798_p0 }
0x1962   : > { %p3794_p13 = pneg %p3793_p12 }
0x1964   : > { %p3801_p3 = pnand %p3800_p2, %p3794_p13 }
0x19d4   : > { %v2345_v31 = vpop.xlane.xlu1 %2344 }
0x19d5   : > { %v2346_v34 = vsub.f32 %v2342_v44, %v2345_v31  ;;  %v3659_v44 = vpack.c.bf16 %v3250_v26, %v3249_v25 }
0x19d7   : > { %v2347_v35 = vmul.f32 1.442695, %v2346_v34 }
0x19d8   : > { %v2355_v36 = vpop.permute.xlu1 %2354 }
0x19d9   : > { %3775 = vpow2.f32 %v2347_v35  ;;  %3540 = vmatpush3.msra.mxu1 %v2355_v36  ;;  %v2761_v36 = vrot.slane %v4253_v40, %v1485_v32  ;;  %v3255_v32 = vld [vmem:[%s4512_s5 + $0x48] sm:$0xff] }
0x19da   : > { %3549 = vmatprep.subr.mxu1 %v3858_v14 }
0x19dc   : > { %v2507_v53 = vpop.permute.xlu1 %2506 }
0x19e0   : > { %v2505_v55 = vpop.permute.xlu1 %2504 }
0x19e3   : > { %v3776_v37 = vpop.eup %3775 }
0x19e4   : > { %v2349_v41 = vsel %vm508_vm4, %v3776_v37, 0.0 }
0x19e5   : > { %2350 = vadd.xlane.f32.xlu0 %v2349_v41 }
0x1a13   : > { %v2259_v48 = vpop.f32.mrb[24].mxu1 }
0x1a14   : > { %v2263_v49 = vadd.f32 %v2259_v48, %v2023_v43  ;;  %v3533_v46 = vpop.f32.mrb[25].mxu1 }
0x1a72   : > { %v2351_v51 = vpop.xlane.xlu0 %2350 }
0x1a73   : > { %3777 = vrcp.f32 %v2351_v51  ;;  %v3257_v51 = vld [vmem:[%s4512_s5 + $0x58] sm:$0xff] }
0x1a7d   : > { %v3778_v52 = vpop.eup %3777 }
0x1a7e   : > { %v2353_v54 = vmul.f32 %v3778_v52, %v3776_v37  ;;  %v3668_v52 = vpack.c.bf16 %v3257_v51, %v3256_v33 }
0x1a80   : > { %3542 = vmatmul.mubr.msk.f32.vlgmr.msra.gmra.mrb[26].mxu1 %vm508_vm4, %v2353_v54  ;;  %v3259_v54 = vld [vmem:[%s4512_s5 + $0x68] sm:$0xff] }
0x1a81   : > { %3550 = vmatpush3.xpose.msk.msra.mxu1 %vm508_vm4, %v2507_v53  ;;  %3551 = vmatprep.mubr.msk.f32.mxu1 %vm3857_vm0, %v3858_v14  ;;  %v3258_v53 = vld [vmem:[%s4512_s5 + $0x60] sm:$0xff] }
0x1a82   : > { %3559 = vmatprep.subr.mxu1 %v3858_v14 }
0x1a84   : > { %3552 = vmatmul.mubr.msk.f32.vlgmr.msra.gmra.mrb[28].mxu1 %vm508_vm4, %v2505_v55  ;;  %v3671_v55 = vpack.c.bf16 %v3259_v54, %v3258_v53 }
0x1a85   : > { %3561 = vmatprep.mubr.msk.f32.mxu1 %vm3857_vm0, %v3858_v14  ;;  %3560 = vmatpush3.msra.mxu1 %v3231_v5 }
0x1a86   : > { %3664 = vmatprep.subr.bf16.mxu1 %v3856_v4 }
0x1b53   : > { %v2426_v56 = vpop.f32.mrb[26].mxu1 }
0x1b54   : > { %v3543_v57 = vpop.f32.mrb[27].mxu1  ;;  %3547 = vmatmul.mubr.msk.f32.vlgmr.msra.gmra.mrb[22].mxu0 %vm508_vm4, %v2426_v56  ;;  %v3261_v56 = vld [vmem:[%s4512_s5 + $0x78] sm:$0xff] }
0x1b55   : > { %3556 = vmatprep.mubr.msk.f32.mxu0 %vm3857_vm0, %v3858_v14  ;;  %v3674_v57 = vpack.c.bf16 %v3261_v56, %v3260_v39 }
0x1b57   : > { %v2578_v59 = vpop.f32.mrb[28].mxu1 }
0x1b58   : > { %v2582_v60 = vmul.f32 0.35355338, %v2578_v59  ;;  %v3553_v61 = vpop.f32.mrb[29].mxu1  ;;  %v2776_v59 = vrot.slane %v4253_v40, %v1499_v58 }
0x1b5a   : > { %v2583_v62 = vsel %vm508_vm4, %v2582_v60, -inf }
0x1b5b   : > { %2584 = vmax.xlane.f32.xlu1 %v2583_v62 }
0x1be8   : > { %v2585_v63 = vpop.xlane.xlu1 %2584 }
0x1be9   : > { %v2586_v0 = vsub.f32 %v2582_v60, %v2585_v63 }
0x1beb   : > { %v2587_v1 = vmul.f32 1.442695, %v2586_v0 }
0x1bed   : > { %3779 = vpow2.f32 %v2587_v1 }
0x1bf7   : > { %v3780_v2 = vpop.eup %3779 }
0x1bf8   : > { %v2589_v3 = vsel %vm508_vm4, %v3780_v2, 0.0 }
0x1bf9   : > { %2590 = vadd.xlane.f32.xlu0 %v2589_v3 }
0x1c0f   : > { %2594 = vrot.lane.b32.xlu0 %v4258_v47, %s4531_s21  ;;  %s3128_s21 = scalar_lea.sflag [#allocation3], %s294_s22 }
0x1c27   : > { %v2499_v50 = vpop.f32.mrb[22].mxu0 }
0x1c28   : > { %v2503_v6 = vadd.f32 %v2499_v50, %v2263_v49  ;;  %v3548_v7 = vpop.f32.mrb[23].mxu0  ;;  %v3254_v49 = vld [vmem:[%s4512_s5 + $0x40] sm:$0xff] }
0x1c29   : > { %v3665_v46 = vpack.c.bf16 %v3255_v32, %v3254_v49 }
0x1c86   : > { %v2591_v9 = vpop.xlane.xlu0 %2590 }
0x1c87   : > { %3781 = vrcp.f32 %v2591_v9  ;;  %v2871_v9 = vrot.slane %v4253_v40, %v1593_v8  ;;  %v2970_v8 = vld [vmem:[%s4514_s7 + $0x18] sm:$0xff] }
0x1c8a   : > { %v2595_v10 = vpop.permute.xlu0 %2594 }
0x1c8b   : > { %3555 = vmatpush3.msra.mxu0 %v2595_v10 }
0x1c8c   : > { %3658 = vmatprep.subr.bf16.mxu0 %v3856_v4 }
0x1c91   : > { %v3782_v11 = vpop.eup %3781 }
0x1c92   : > { %v2593_v12 = vmul.f32 %v3782_v11, %v3780_v2 }
0x1c94   : > { %3557 = vmatmul.mubr.msk.f32.vlgmr.msra.gmra.mrb[24].mxu0 %vm508_vm4, %v2593_v12 }
0x1c95   : > { %3572 = vmatprep.mubr.msk.f32.mxu0 %vm3857_vm0, %v3858_v14  ;;  %3660 = vmatpush3.bf16.msra.mxu0 %v3659_v44  ;;  %v2962_v44 = vrot.slane %v4253_v40, %v1684_v29  ;;  %v3049_v29 = vld [vmem:[%s4514_s7 + $0x38] sm:$0xff] }
0x1c96   : > { %3661 = vmatprep.subr.bf16.mxu0 %v3856_v4 }
0x1d67   : > { %v2666_v47 = vpop.f32.mrb[24].mxu0 }
0x1d68   : > { %v3558_v13 = vpop.f32.mrb[25].mxu0  ;;  %3562 = vmatmul.mubr.msk.f32.vlgmr.msra.gmra.mrb[30].mxu1 %vm508_vm4, %v2666_v47 }
0x1d69   : > { %3591 = vmatprep.mubr.msk.f32.mxu1 %vm3857_vm0, %v3858_v14  ;;  %3666 = vmatpush3.bf16.msra.mxu1 %v3665_v46 }
0x1d6a   : > { %3667 = vmatprep.subr.bf16.mxu1 %v3856_v4 }
0x1d6d   : > { %3669 = vmatpush3.bf16.msra.mxu1 %v3668_v52 }
0x1d6e   : > { %3670 = vmatprep.subr.bf16.mxu1 %v3856_v4 }
0x1d71   : > { %3672 = vmatpush3.bf16.msra.mxu1 %v3671_v55 }
0x1d72   : > { %3673 = vmatprep.subr.bf16.mxu1 %v3856_v4 }
0x1d75   : > { %3675 = vmatpush3.bf16.msra.mxu1 %v3674_v57 }
0x1e3b   : > { %v2739_v15 = vpop.f32.mrb[30].mxu1 }
0x1e3c   : > { %v2743_v16 = vadd.f32 %v2739_v15, %v2503_v6  ;;  %v3563_v17 = vpop.f32.mrb[31].mxu1 }
0x1e3e   : > { %v2744_v18 = vadd.f32 %v2743_v16, %v4244_v38  ;;  %v3251_v38 = vld [vmem:[%s4511_s4 + $0x30] sm:$0xff] }
0x1e3f   : > { %v3662_v28 = vpack.c.bf16 %v3252_v27, %v3251_v38 }
0x1e40   : > { %v2745_v19 = vsel %vm394_vm3, %v2744_v18, 0.0 }
0x1e41   : > { %2746 = vadd.xlane.f32.xlu0 %v2745_v19  ;;  %3663 = vmatpush3.bf16.msra.mxu0 %v3662_v28  ;;  %v2969_v19 = vld [vmem:[%s4514_s7 + $0x10] sm:$0xff]  ;;  %v2967_v28 = vrot.slane %v4253_v40, %v1689_v30  ;;  %v3051_v40 = vld [vmem:[%s4514_s7 + $0x48] sm:$0xff] }
0x1e42   : > { %3676 = vmatprep.subr.bf16.mxu0 %v3856_v4 }
0x1ece   : > { %v2747_v20 = vpop.xlane.xlu0 %2746 }
0x1ecf   : > { %v2748_v21 = vmul.f32 0.03125, %v2747_v20  ;;  %v3677_v20 = vpack.c.bf16 %v2970_v8, %v2969_v19 }
0x1ed1   : > { %v2749_v22 = vsub.f32 %v2744_v18, %v2748_v21  ;;  %v2971_v21 = vld [vmem:[%s4514_s7 + $0x20] sm:$0xff] }
0x1ed3   : > { %v2750_v23 = vmul.f32 %v2749_v22, %v2749_v22 }
0x1ed5   : > { %v2751_v24 = vsel %vm394_vm3, %v2750_v23, 0.0 }
0x1ed6   : > { %2752 = vadd.xlane.f32.xlu1 %v2751_v24 }
0x1f63   : > { %v2753_v31 = vpop.xlane.xlu1 %2752 }
0x1f64   : > { %v2754_v34 = vmul.f32 0.03125, %v2753_v31 }
0x1f66   : > { %v2755_v35 = vadd.f32 1e-12, %v2754_v34 }
0x1f68   : > { %3783 = vrsqrt.f32 %v2755_v35  ;;  %v3048_v35 = vld [vmem:[%s4514_s7 + $0x30] sm:$0xff] }
0x1f69   : > { %v3683_v30 = vpack.c.bf16 %v3049_v29, %v3048_v35 }
0x1f72   : > { %v3784_v37 = vpop.eup %3783 }
0x1f73   : > { %v2757_v41 = vmul.f32 %v3784_v37, %v2749_v22  ;;  %v2972_v22 = vld [vmem:[%s4514_s7 + $0x28] sm:$0xff] }
0x1f74   : > { %v3680_v23 = vpack.c.bf16 %v2972_v22, %v2971_v21 }
0x1f75   : > { %v2762_v43 = vmul.f32 %v2761_v36, %v2757_v41  ;;  %v2973_v36 = vld [vmem:[%s4514_s7 + $0xa] sm:$0x1] }
0x1f77   : > { %v2767_v48 = vadd.f32 %v2766_v42, %v2762_v43 }
0x1f79   : > { %3573 = vmatmul.mubr.msk.f32.vlgmr.msra.gmra.mrb[26].mxu0 %vm394_vm3, %v2767_v48 }
0x1f7a   : > { %3602 = vmatprep.mubr.msk.f32.mxu0 %vm3857_vm0, %v3858_v14  ;;  %3678 = vmatpush3.bf16.msra.mxu0 %v3677_v20 }
0x1f7b   : > { %3679 = vmatprep.subr.bf16.mxu0 %v3856_v4 }
0x1f7e   : > { %3681 = vmatpush3.bf16.msra.mxu0 %v3680_v23 }
0x1f7f   : > { %3682 = vmatprep.subr.bf16.mxu0 %v3856_v4 }
0x204c   : > { %v2846_v60 = vpop.f32.mrb[26].mxu0 }
0x204d   : > { %v2847_v61 = vadd.f32 %v2846_v60, %v2776_v59  ;;  %v3574_v62 = vpop.f32.mrb[27].mxu0 }
0x204f   : > { %v2851_v63 = vmul.f32 0.044715, %v2847_v61  ;;  %v2850_v50 = vmul.f32 0.5, %v2847_v61 }
0x2051   : > { %v2852_v0 = vmul.f32 %v2851_v63, %v2847_v61 }
0x2053   : > { %v2853_v1 = vmul.f32 %v2852_v0, %v2847_v61 }
0x2055   : > { %v2854_v2 = vadd.f32 %v2853_v1, %v2847_v61 }
0x2057   : > { %v2855_v3 = vmul.f32 0.7978846, %v2854_v2 }
0x2059   : > { %3785 = vtanh.f32 %v2855_v3 }
0x2063   : > { %v3786_v5 = vpop.eup %3785 }
0x2064   : > { %v2857_v6 = vadd.f32 1.0, %v3786_v5 }
0x2066   : > { %v2858_v7 = vmul.f32 %v2857_v6, %v2850_v50 }
0x2068   : > { %3592 = vmatmul.mubr.msk.f32.vlgmr.msra.gmra.mrb[32].mxu1 %vm318_vm1, %v2858_v7 }
0x213b   : > { %v2941_v58 = vpop.f32.mrb[32].mxu1 }
0x213c   : > { %v2942_v10 = vadd.f32 %v2941_v58, %v2871_v9  ;;  %v3593_v11 = vpop.f32.mrb[33].mxu1 }
0x213e   : > { %v2945_v12 = vadd.f32 %v2942_v10, %v2767_v48 }
0x2140   : > { %v2946_v47 = vsel %vm394_vm3, %v2945_v12, 0.0 }
0x2141   : > { %2947 = vadd.xlane.f32.xlu1 %v2946_v47 }
0x21ce   : > { %v2948_v13 = vpop.xlane.xlu1 %2947 }
0x21cf   : > { %v2949_v15 = vmul.f32 0.03125, %v2948_v13 }
0x21d1   : > { %v2950_v16 = vsub.f32 %v2945_v12, %v2949_v15 }
0x21d3   : > { %v2951_v17 = vmul.f32 %v2950_v16, %v2950_v16 }
0x21d5   : > { %v2952_v18 = vsel %vm394_vm3, %v2951_v17, 0.0 }
0x21d6   : > { %2953 = vadd.xlane.f32.xlu1 %v2952_v18 }
0x2263   : > { %v2954_v24 = vpop.xlane.xlu1 %2953 }
0x2264   : > { %v2955_v25 = vmul.f32 0.03125, %v2954_v24 }
0x2266   : > { %v2956_v26 = vadd.f32 1e-12, %v2955_v25 }
0x2268   : > { %3787 = vrsqrt.f32 %v2956_v26 }
0x2272   : > { %v3788_v38 = vpop.eup %3787 }
0x2273   : > { %v2958_v27 = vmul.f32 %v3788_v38, %v2950_v16 }
0x2275   : > { %v2963_v31 = vmul.f32 %v2962_v44, %v2958_v27 }
0x2277   : > { %v2968_v34 = vadd.f32 %v2967_v28, %v2963_v31 }
0x2279   : > { %3603 = vmatmul.mubr.msk.f32.vlgmr.msra.gmra.mrb[28].mxu0 %vm394_vm3, %v2968_v34 }
0x227a   : > { %3613 = vmatprep.mubr.msk.f32.mxu0 %vm3857_vm0, %v3858_v14  ;;  %3684 = vmatpush3.bf16.msra.mxu0 %v3683_v30  ;;  %v3686_v14 = vpack.c.bf16 %v3051_v40, %v3050_v45 }
0x227b   : > { %3685 = vmatprep.subr.bf16.mxu0 %v3856_v4 }
0x227e   : > { %3687 = vmatpush3.bf16.msra.mxu0 %v3686_v14 }
0x234c   : > { %v3043_v37 = vpop.f32.mrb[28].mxu0 }
0x234d   : > { %v3044_v41 = vadd.f32 %v3043_v37, %v2973_v36  ;;  %v3604_v42 = vpop.f32.mrb[29].mxu0 }
0x234f   : > { %3789 = vtanh.f32 %v3044_v41 }
0x2359   : > { %v3790_v43 = vpop.eup %3789 }
0x235a   : > { %3614 = vmatmul.mubr.msk.f32.vlgmr.msra.gmra.mrb[30].mxu0 %vm394_vm3, %v3790_v43 }
0x242d   : > { %v3121_v4 = vpop.f32.mrb[30].mxu0 }
0x242e   : > { %3126 = vst.msk [vmem:[%s295_s26] sm:$0x1] %vm3125_vm5, %v3121_v4  ;;  %v3615_v48 = vpop.f32.mrb[31].mxu0 }
0x242f   : > { %3804 = shalt.err (!%p3801_p3)
}
0x2430   : > { %s3805_s18 = scalar_lea.hbm %s4465_s20, 16  ;;  %s3809_s23 = scalar_lea.hbm %s4515_s8, 32 }
0x2431   : > { %p3806_p4 = scmp.ne.s32.totalorder %s4465_s20, %s3805_s18  ;;  %p3810_p9 = scmp.lt.u32.totalorder %s4465_s20, %s4515_s8 }
0x2432   : > { %p3811_p10 = scmp.lt.u32.totalorder %s3809_s23, %s3805_s18  ;;  %p3813_p12 = scmp.lt.u32.totalorder %s3805_s18, %s4465_s20 }
0x2433   : > { %p3807_p7 = pnand %p3806_p4, %p3954_p5 }
0x2434   : > { %p3812_p11 = por %p3811_p10, %p3810_p9 }
0x2435   : > { %p3808_p8 = pneg %p3807_p7 }
0x2436   : > { %p3814_p13 = por %p3813_p12, %p3812_p11 }
0x2438   : > { %p3815_p0 = pnand %p3814_p13, %p3808_p8 }
0x243a   : > { %3818 = shalt.err (!%p3815_p0)
}
0x243b   : > { %3688 = dma.vmem_to_hbm [thread:$0]  (%p3954_p5), %s4467_s10, 16, %s4465_s20, %s3128_s21  }
0x243c PF: > { %p3694_p1 = scmp.ge.s32.totalorder %s3853_s30, 2  ;;  %s3152_s25 = sand.u32 1, %s3841_s27  }
0x243d   : > { %s3153_s12 = scalar_lea.sflag [#allocation3], %s3152_s25 }
0x243e   : > { %p3691_p2 = pnand %p3694_p1, %p3958_p6 }
0x2440   : > { %3836 = dma.done.wait (!%p3691_p2), %s3153_s12, 16  }
0x2441   : > { %3838 = vsyncadd (!%p3691_p2), %s3153_s12, 4294967280  ;;  %p18_p3 = scmp.ge.s32.totalorder %s3941_s11, 4   ;;  %s4532_s27 = smov %s3845_s28 }
0x2442   : > { %s4533_s28 = smov %s3849_s29  ;;  %s4534_s29 = smov %s3952_s14 }
0x2443   : > { %s4535_s30 = smov %s3941_s11  ;;  %20 = sbr.rel (!%p18_p3) target bundleno = 3 (0x3), region = 92 }
0x244a   :  { %3157 = vsyncpa [#allocation3], 1 }
0x244b   :  { %3159 = vsyncpa [#allocation3 + $0x1], 1 }

</bundles_post_ra>
